<compile_context>
chip_gen: v6e
topology: v6e:2x2x1
jax: 0.10.0
libtpu: 0.0.40
codegen_flags: <defaults>
</compile_context>

<pallas_src>
import jax
import jax.numpy as jnp
from jax.experimental import pallas as pl
from jax.experimental.pallas import tpu as pltpu

BN_EPS = 1e-5


def _round_up(x, m):
    return (x + m - 1) // m * m


def _vmem_limit_bytes():
    """Generation-aware scoped-VMEM limit (v5e/v6e: ~96 MiB, v7x: ~48 MiB)."""
    try:
        phys = int(pltpu.get_tpu_info().vmem_capacity_bytes)
    except Exception:
        phys = 64 * 1024 * 1024          # conservative: v7x physical VMEM
    return max(32 * 1024 * 1024, min(phys * 3 // 4, 100 * 1024 * 1024))


def _choose_tile_m(m, k_pad, o_pad, out_itemsize, budget_bytes):
    """Largest M-tile whose pipeline buffers fit the per-generation budget.

    Accounts for: double-buffered streaming patches (bf16) + output tile,
    the f32 in-kernel GEMM/epilogue intermediates, and the weight/bias/affine
    blocks (counted double-buffered so the estimate stays safe even if
    pipeline_mode=Buffered(1) is unavailable).
    """
    cap = max(16, _round_up(m, 16))
    const_bytes = 2 * (k_pad * o_pad * 2 + 3 * o_pad * 4)
    for t in (2048, 1024, 512, 256, 128, 64, 32, 16):
        if t > cap:
            continue
        stream = 2 * t * (k_pad * 2 + o_pad * out_itemsize)   # double-buffered
        scratch = 2 * t * o_pad * 4                           # f32 intermediates
        if const_bytes + stream + scratch <= budget_bytes:
            return t
    return 16


def _const_spec(shape, index_map):
    """BlockSpec for an operand identical on every grid step: single-buffer it
    (frees VMEM) when this JAX version supports pipeline_mode."""
    try:
        return pl.BlockSpec(shape, index_map, pipeline_mode=pl.Buffered(1))
    except TypeError:
        return pl.BlockSpec(shape, index_map)


# --------------------------------------------------------------------------
# Pass 1: conv-as-GEMM + bias + ReLU, per-tile partial BN statistics.
# --------------------------------------------------------------------------
def _conv_relu_partial_stats(patches, w, bias, tile_m, m_actual, vmem_limit):
    m_pad, k_pad = patches.shape
    o_pad = w.shape[1]
    num_tiles = m_pad // tile_m
    needs_mask = (m_pad != m_actual)

    def kernel(p_ref, w_ref, b_ref, stats_ref):
        # bf16 x bf16 -> f32 accumulation on the MXU; f32 epilogue.
        y = jnp.dot(p_ref[...], w_ref[...], preferred_element_type=jnp.float32)
        y = jnp.maximum(y + b_ref[...], 0.0)

        def emit(yv):
            stats_ref[0:1, 0:1, :] = jnp.sum(yv, axis=0, keepdims=True)[None]
            stats_ref[0:1, 1:2, :] = jnp.sum(yv * yv, axis=0, keepdims=True)[None]

        if needs_mask:
            i = pl.program_id(0)
            last = pl.num_programs(0) - 1

            @pl.when(i != last)
            def _():
                emit(y)

            @pl.when(i == last)
            def _():
                # Mask rows that only exist because M was padded to a tile multiple.
                row = i * tile_m + jax.lax.broadcasted_iota(
                    jnp.int32, (tile_m, 1), 0)
                emit(jnp.where(row < m_actual, y, 0.0))
        else:
            emit(y)

    cost = pl.CostEstimate(
        flops=2 * m_pad * k_pad * o_pad,
        transcendentals=0,
        bytes_accessed=(patches.size * patches.dtype.itemsize
                        + w.size * w.dtype.itemsize
                        + o_pad * 4
                        + num_tiles * 2 * o_pad * 4),
    )

    return pl.pallas_call(
        kernel,
        out_shape=jax.ShapeDtypeStruct((num_tiles, 2, o_pad), jnp.float32),
        grid=(num_tiles,),
        in_specs=[pl.BlockSpec((tile_m, k_pad), lambda i: (i, 0)),
                  _const_spec((k_pad, o_pad), lambda i: (0, 0)),
                  _const_spec((1, o_pad), lambda i: (0, 0))],
        out_specs=pl.BlockSpec((1, 2, o_pad), lambda i: (i, 0, 0)),
        compiler_params=pltpu.CompilerParams(
            dimension_semantics=("parallel",),
            vmem_limit_bytes=vmem_limit),
        cost_estimate=cost,
    )(patches, w, bias)


# --------------------------------------------------------------------------
# Pass 2: recompute GEMM + bias + ReLU, fused BN apply (y * scale + shift).
# --------------------------------------------------------------------------
def _conv_relu_bn_apply(patches, w, bias, affine, tile_m, out_dtype, vmem_limit):
    m_pad, k_pad = patches.shape
    o_pad = w.shape[1]

    def kernel(p_ref, w_ref, b_ref, a_ref, out_ref):
        y = jnp.dot(p_ref[...], w_ref[...], preferred_element_type=jnp.float32)
        y = jnp.maximum(y + b_ref[...], 0.0)
        out_ref[...] = (y * a_ref[0:1, :] + a_ref[1:2, :]).astype(out_ref.dtype)

    out_bytes = m_pad * o_pad * jnp.dtype(out_dtype).itemsize
    cost = pl.CostEstimate(
        flops=2 * m_pad * k_pad * o_pad,
        transcendentals=0,
        bytes_accessed=(patches.size * patches.dtype.itemsize
                        + w.size * w.dtype.itemsize
                        + 3 * o_pad * 4
                        + out_bytes),
    )

    return pl.pallas_call(
        kernel,
        out_shape=jax.ShapeDtypeStruct((m_pad, o_pad), out_dtype),
        grid=(m_pad // tile_m,),
        in_specs=[pl.BlockSpec((tile_m, k_pad), lambda i: (i, 0)),
                  _const_spec((k_pad, o_pad), lambda i: (0, 0)),
                  _const_spec((1, o_pad), lambda i: (0, 0)),
                  _const_spec((2, o_pad), lambda i: (0, 0))],
        out_specs=pl.BlockSpec((tile_m, o_pad), lambda i: (i, 0)),
        compiler_params=pltpu.CompilerParams(
            dimension_semantics=("parallel",),
            vmem_limit_bytes=vmem_limit),
        cost_estimate=cost,
    )(patches, w, bias, affine)


# --------------------------------------------------------------------------
# JAX glue: bf16 im2col, padding, layer / block wrappers.
# --------------------------------------------------------------------------
def _im2col(x_nhwc, stride):
    """3x3, padding=1 patch extraction. Returns (N*Ho*Wo, 9*C), Ho, Wo."""
    N, H, W, C = x_nhwc.shape
    Ho = (H + 2 - 3) // stride + 1
    Wo = (W + 2 - 3) // stride + 1
    xp = jnp.pad(x_nhwc, ((0, 0), (1, 1), (1, 1), (0, 0)))
    taps = []
    for kh in range(3):
        for kw in range(3):
            taps.append(xp[:,
                           kh: kh + stride * (Ho - 1) + 1: stride,
                           kw: kw + stride * (Wo - 1) + 1: stride,
                           :])
    patches = jnp.stack(taps, axis=3)            # (N, Ho, Wo, 9, C), (kh,kw) order
    return patches.reshape(N * Ho * Wo, 9 * C), Ho, Wo


def _conv_relu_bn_layer(x_nhwc, w_oihw, bias, gamma, beta, stride, out_dtype):
    N = x_nhwc.shape[0]
    O, Cin, KH, KW = w_oihw.shape

    # bf16 BEFORE im2col: the materialized patch matrix (the largest XLA-side
    # intermediate) is bf16, and it is exactly the MXU operand dtype.
    x16 = x_nhwc.astype(jnp.bfloat16)
    patches, Ho, Wo = _im2col(x16, stride)
    M, K = patches.shape

    o_pad = _round_up(O, 128)              # lane-dense output (no masked stores)
    k_pad = _round_up(K, 128)              # lane-dense patch loads, MXU-aligned K
    out_itemsize = jnp.dtype(out_dtype).itemsize
    vmem_limit = _vmem_limit_bytes()
    tile_m = _choose_tile_m(M, k_pad, o_pad, out_itemsize, vmem_limit // 2)
    m_pad = _round_up(M, tile_m)

    patches_p = jnp.pad(patches, ((0, m_pad - M), (0, k_pad - K)))   # bf16
    # PyTorch weight (O, Cin, kh, kw) -> (kh, kw, Cin, O) -> (9*Cin, O) to match patch order.
    w_mat = jnp.transpose(w_oihw, (2, 3, 1, 0)).reshape(KH * KW * Cin, O)
    w_p = jnp.pad(w_mat, ((0, k_pad - K), (0, o_pad - O))).astype(jnp.bfloat16)
    b_p = jnp.pad(bias.astype(jnp.float32).reshape(1, O), ((0, 0), (0, o_pad - O)))

    # Pass 1: per-tile partial statistics (parallel grid -> both TCs on v7x).
    partial = _conv_relu_partial_stats(patches_p, w_p, b_p, tile_m, M, vmem_limit)

    # Tiny finalize in plain JAX: reduce partials, fold BN affine into (scale, shift).
    inv_m = 1.0 / M
    sums = jnp.sum(partial[:, 0, :], axis=0)
    sqs = jnp.sum(partial[:, 1, :], axis=0)
    mean = sums * inv_m
    var = jnp.maximum(sqs * inv_m - mean * mean, 0.0)
    inv_std = jax.lax.rsqrt(var + BN_EPS)
    gamma_p = jnp.pad(gamma.astype(jnp.float32), (0, o_pad - O))
    beta_p = jnp.pad(beta.astype(jnp.float32), (0, o_pad - O))
    scale = gamma_p * inv_std
    shift = beta_p - mean * scale
    affine = jnp.stack([scale, shift], axis=0)   # (2, o_pad)

    # Pass 2: recompute GEMM + ReLU, write BN-applied output directly.
    out = _conv_relu_bn_apply(patches_p, w_p, b_p, affine, tile_m, out_dtype,
                              vmem_limit)
    return out[:M, :O].reshape(N, Ho, Wo, O)


def convolution_block_forward(x_nchw, params):
    """Equivalent of ConvolutionBlock.forward (training-mode BatchNorm). NCHW in/out."""
    x = jnp.transpose(x_nchw, (0, 2, 3, 1))     # NCHW -> NHWC
    # Layer-1 output stored bf16: it is layer-2's bf16 MXU operand anyway.
    x = _conv_relu_bn_layer(x, params["w1"], params["b1"], params["g1"],
                            params["beta1"], stride=1, out_dtype=jnp.bfloat16)
    x = _conv_relu_bn_layer(x, params["w2"], params["b2"], params["g2"],
                            params["beta2"], stride=2, out_dtype=jnp.float32)
    return jnp.transpose(x, (0, 3, 1, 2))       # NHWC -> NCHW


def _reference_forward(x_nchw, params):
    """Pure-JAX f32 reference (lax conv + ReLU + training-mode BN)."""
    def layer(x, w, b, g, beta, stride):
        y = jax.lax.conv_general_dilated(
            x, w, window_strides=(stride, stride), padding=((1, 1), (1, 1)),
            dimension_numbers=("NCHW", "OIHW", "NCHW"))
        y = jnp.maximum(y + b[None, :, None, None], 0.0)
        mean = jnp.mean(y, axis=(0, 2, 3), keepdims=True)
        var = jnp.mean(jnp.square(y - mean), axis=(0, 2, 3), keepdims=True)
        return ((y - mean) * jax.lax.rsqrt(var + BN_EPS)
                * g[None, :, None, None] + beta[None, :, None, None])

    x = layer(x_nchw, params["w1"], params["b1"], params["g1"], params["beta1"], 1)
    x = layer(x, params["w2"], params["b2"], params["g2"], params["beta2"], 2)
    return x


def init_params(key, in_channels, out_channels):
    """PyTorch-style init (uniform +-1/sqrt(fan_in); BN gamma=1, beta=0)."""
    k1, k2, k3, k4 = jax.random.split(key, 4)
    fan1 = in_channels * 9
    fan2 = out_channels * 9
    b1 = 1.0 / jnp.sqrt(jnp.float32(fan1))
    b2 = 1.0 / jnp.sqrt(jnp.float32(fan2))
    return {
        "w1": jax.random.uniform(k1, (out_channels, in_channels, 3, 3),
                                 jnp.float32, -b1, b1),
        "b1": jax.random.uniform(k2, (out_channels,), jnp.float32, -b1, b1),
        "g1": jnp.ones((out_channels,), jnp.float32),
        "beta1": jnp.zeros((out_channels,), jnp.float32),
        "w2": jax.random.uniform(k3, (out_channels, out_channels, 3, 3),
                                 jnp.float32, -b2, b2),
        "b2": jax.random.uniform(k4, (out_channels,), jnp.float32, -b2, b2),
        "g2": jnp.ones((out_channels,), jnp.float32),
        "beta2": jnp.zeros((out_channels,), jnp.float32),
    }


if __name__ == "__main__":
    key = jax.random.PRNGKey(0)
    kx, kp = jax.random.split(key)

    in_channels, out_channels = 4, 8
    N, H, W = 2, 16, 16
    x = jax.random.normal(kx, (N, in_channels, H, W), dtype=jnp.float32)
    params = init_params(kp, in_channels, out_channels)

    fwd = jax.jit(convolution_block_forward)
    y = fwd(x, params)
    jax.block_until_ready(y)

    # Shape/dtype parity with the PyTorch module (stride-2 second conv).
    assert y.shape == (N, out_channels, H // 2, W // 2), y.shape
    assert y.dtype == jnp.float32

    # Numerical parity vs f32 reference (bf16 MXU operands -> tolerance check).
    y_ref = jax.jit(_reference_forward)(x, params)
    jax.block_until_ready(y_ref)
    max_err = float(jnp.max(jnp.abs(y - y_ref)))
    assert max_err < 0.2, max_err

    print("KERNEL_OK")
</pallas_src>

<mosaic_0001>
module attributes {stable_mosaic.version = 11 : i64} {
  func.func @kernel(%arg0: i32, %arg1: memref<512x128xbf16, #tpu.memory_space<vmem>>, %arg2: memref<128x128xbf16, #tpu.memory_space<vmem>>, %arg3: memref<1x128xf32, #tpu.memory_space<vmem>>, %arg4: memref<1x2x128xf32, #tpu.memory_space<vmem>>) attributes {dimension_semantics = [#tpu.dimension_semantics<parallel>], iteration_bounds = array<i64: 1>, scalar_prefetch = 0 : i64, scratch_operands = 0 : i64, tpu.core_type = #tpu.core_type<tc>, window_params = [{transform_indices = @transform_0, window_bounds = array<i64: 512, 128>}, {pipeline_mode = #tpu.pipeline_mode<synchronous>, transform_indices = @transform_1, window_bounds = array<i64: 128, 128>}, {pipeline_mode = #tpu.pipeline_mode<synchronous>, transform_indices = @transform_2, window_bounds = array<i64: 1, 128>}, {transform_indices = @transform_3, window_bounds = array<i64: 1, 2, 128>}]} {
    %c0 = arith.constant 0 : index
    %c0_0 = arith.constant 0 : index
    %0 = vector.load %arg1[%c0, %c0_0] : memref<512x128xbf16, #tpu.memory_space<vmem>>, vector<512x128xbf16>
    %c0_1 = arith.constant 0 : index
    %c0_2 = arith.constant 0 : index
    %1 = vector.load %arg2[%c0_1, %c0_2] : memref<128x128xbf16, #tpu.memory_space<vmem>>, vector<128x128xbf16>
    %cst = arith.constant dense<0.000000e+00> : vector<512x128xf32>
    %2 = tpu.matmul %0, %1, %cst {dimension_numbers = #tpu.dot_dimension_numbers<[1], [0], [0], [1], [0, 0, 1, 1], [], []>} : vector<512x128xbf16>, vector<128x128xbf16>, vector<512x128xf32> -> vector<512x128xf32>
    %c0_3 = arith.constant 0 : index
    %c0_4 = arith.constant 0 : index
    %3 = vector.load %arg3[%c0_3, %c0_4] : memref<1x128xf32, #tpu.memory_space<vmem>>, vector<1x128xf32>
    %4 = vector.broadcast %3 : vector<1x128xf32> to vector<512x128xf32>
    %5 = arith.addf %2, %4 : vector<512x128xf32>
    %cst_5 = arith.constant 0.000000e+00 : f32
    %6 = vector.broadcast %cst_5 : f32 to vector<512x128xf32>
    %7 = arith.maximumf %5, %6 : vector<512x128xf32>
    %cst_6 = arith.constant dense<0.000000e+00> : vector<128xf32>
    %8 = vector.multi_reduction <add>, %7, %cst_6 [0] : vector<512x128xf32> to vector<128xf32>
    %9 = vector.shape_cast %8 : vector<128xf32> to vector<1x128xf32>
    %10 = vector.shape_cast %9 : vector<1x128xf32> to vector<1x1x128xf32>
    %c0_7 = arith.constant 0 : index
    %c0_8 = arith.constant 0 : index
    %c0_9 = arith.constant 0 : index
    %11 = vector.load %arg4[%c0_7, %c0_8, %c0_9] : memref<1x2x128xf32, #tpu.memory_space<vmem>>, vector<1x1x128xf32>
    tpu.vector_store %arg4[%c0_7, %c0_8, %c0_9], %10 {strides = array<i32>} : memref<1x2x128xf32, #tpu.memory_space<vmem>>, vector<1x1x128xf32>,
    %12 = arith.mulf %7, %7 : vector<512x128xf32>
    %cst_10 = arith.constant dense<0.000000e+00> : vector<128xf32>
    %13 = vector.multi_reduction <add>, %12, %cst_10 [0] : vector<512x128xf32> to vector<128xf32>
    %14 = vector.shape_cast %13 : vector<128xf32> to vector<1x128xf32>
    %15 = vector.shape_cast %14 : vector<1x128xf32> to vector<1x1x128xf32>
    %c0_11 = arith.constant 0 : index
    %c1 = arith.constant 1 : index
    %c0_12 = arith.constant 0 : index
    %16 = vector.load %arg4[%c0_11, %c1, %c0_12] : memref<1x2x128xf32, #tpu.memory_space<vmem>>, vector<1x1x128xf32>
    tpu.vector_store %arg4[%c0_11, %c1, %c0_12], %15 {strides = array<i32>} : memref<1x2x128xf32, #tpu.memory_space<vmem>>, vector<1x1x128xf32>,
    return
  }
  func.func @transform_0(%arg0: i32) -> (i32, i32) {
    %c0_i32 = arith.constant 0 : i32
    %c0_i32_0 = arith.constant 0 : i32
    return %arg0, %c0_i32 : i32, i32
  }
  func.func @transform_1(%arg0: i32) -> (i32, i32) {
    %c0_i32 = arith.constant 0 : i32
    %c0_i32_0 = arith.constant 0 : i32
    %c0_i32_1 = arith.constant 0 : i32
    return %c0_i32, %c0_i32_0 : i32, i32
  }
  func.func @transform_2(%arg0: i32) -> (i32, i32) {
    %c0_i32 = arith.constant 0 : i32
    %c0_i32_0 = arith.constant 0 : i32
    %c0_i32_1 = arith.constant 0 : i32
    return %c0_i32, %c0_i32_0 : i32, i32
  }
  func.func @transform_3(%arg0: i32) -> (i32, i32, i32) {
    %c0_i32 = arith.constant 0 : i32
    %c0_i32_0 = arith.constant 0 : i32
    %c0_i32_1 = arith.constant 0 : i32
    return %arg0, %c0_i32, %c0_i32_0 : i32, i32, i32
  }
}

module attributes {stable_mosaic.version = 11 : i64} {
  func.func @kernel(%arg0: i32, %arg1: memref<512x128xbf16, #tpu.memory_space<vmem>>, %arg2: memref<128x128xbf16, #tpu.memory_space<vmem>>, %arg3: memref<1x128xf32, #tpu.memory_space<vmem>>, %arg4: memref<2x128xf32, #tpu.memory_space<vmem>>, %arg5: memref<512x128xbf16, #tpu.memory_space<vmem>>) attributes {dimension_semantics = [#tpu.dimension_semantics<parallel>], iteration_bounds = array<i64: 1>, scalar_prefetch = 0 : i64, scratch_operands = 0 : i64, tpu.core_type = #tpu.core_type<tc>, window_params = [{transform_indices = @transform_0, window_bounds = array<i64: 512, 128>}, {pipeline_mode = #tpu.pipeline_mode<synchronous>, transform_indices = @transform_1, window_bounds = array<i64: 128, 128>}, {pipeline_mode = #tpu.pipeline_mode<synchronous>, transform_indices = @transform_2, window_bounds = array<i64: 1, 128>}, {pipeline_mode = #tpu.pipeline_mode<synchronous>, transform_indices = @transform_3, window_bounds = array<i64: 2, 128>}, {transform_indices = @transform_4, window_bounds = array<i64: 512, 128>}]} {
    %c0 = arith.constant 0 : index
    %c0_0 = arith.constant 0 : index
    %0 = vector.load %arg1[%c0, %c0_0] : memref<512x128xbf16, #tpu.memory_space<vmem>>, vector<512x128xbf16>
    %c0_1 = arith.constant 0 : index
    %c0_2 = arith.constant 0 : index
    %1 = vector.load %arg2[%c0_1, %c0_2] : memref<128x128xbf16, #tpu.memory_space<vmem>>, vector<128x128xbf16>
    %cst = arith.constant dense<0.000000e+00> : vector<512x128xf32>
    %2 = tpu.matmul %0, %1, %cst {dimension_numbers = #tpu.dot_dimension_numbers<[1], [0], [0], [1], [0, 0, 1, 1], [], []>} : vector<512x128xbf16>, vector<128x128xbf16>, vector<512x128xf32> -> vector<512x128xf32>
    %c0_3 = arith.constant 0 : index
    %c0_4 = arith.constant 0 : index
    %3 = vector.load %arg3[%c0_3, %c0_4] : memref<1x128xf32, #tpu.memory_space<vmem>>, vector<1x128xf32>
    %4 = vector.broadcast %3 : vector<1x128xf32> to vector<512x128xf32>
    %5 = arith.addf %2, %4 : vector<512x128xf32>
    %cst_5 = arith.constant 0.000000e+00 : f32
    %6 = vector.broadcast %cst_5 : f32 to vector<512x128xf32>
    %7 = arith.maximumf %5, %6 : vector<512x128xf32>
    %c0_6 = arith.constant 0 : index
    %c0_7 = arith.constant 0 : index
    %8 = vector.load %arg4[%c0_6, %c0_7] : memref<2x128xf32, #tpu.memory_space<vmem>>, vector<1x128xf32>
    %9 = vector.broadcast %8 : vector<1x128xf32> to vector<512x128xf32>
    %10 = arith.mulf %7, %9 : vector<512x128xf32>
    %c1 = arith.constant 1 : index
    %c0_8 = arith.constant 0 : index
    %11 = vector.load %arg4[%c1, %c0_8] : memref<2x128xf32, #tpu.memory_space<vmem>>, vector<1x128xf32>
    %12 = vector.broadcast %11 : vector<1x128xf32> to vector<512x128xf32>
    %13 = arith.addf %10, %12 : vector<512x128xf32>
    %14 = arith.truncf %13 : vector<512x128xf32> to vector<512x128xbf16>
    %c0_9 = arith.constant 0 : index
    %c0_10 = arith.constant 0 : index
    %15 = vector.load %arg5[%c0_9, %c0_10] : memref<512x128xbf16, #tpu.memory_space<vmem>>, vector<512x128xbf16>
    tpu.vector_store %arg5[%c0_9, %c0_10], %14 {strides = array<i32>} : memref<512x128xbf16, #tpu.memory_space<vmem>>, vector<512x128xbf16>,
    return
  }
  func.func @transform_0(%arg0: i32) -> (i32, i32) {
    %c0_i32 = arith.constant 0 : i32
    %c0_i32_0 = arith.constant 0 : i32
    return %arg0, %c0_i32 : i32, i32
  }
  func.func @transform_1(%arg0: i32) -> (i32, i32) {
    %c0_i32 = arith.constant 0 : i32
    %c0_i32_0 = arith.constant 0 : i32
    %c0_i32_1 = arith.constant 0 : i32
    return %c0_i32, %c0_i32_0 : i32, i32
  }
  func.func @transform_2(%arg0: i32) -> (i32, i32) {
    %c0_i32 = arith.constant 0 : i32
    %c0_i32_0 = arith.constant 0 : i32
    %c0_i32_1 = arith.constant 0 : i32
    return %c0_i32, %c0_i32_0 : i32, i32
  }
  func.func @transform_3(%arg0: i32) -> (i32, i32) {
    %c0_i32 = arith.constant 0 : i32
    %c0_i32_0 = arith.constant 0 : i32
    %c0_i32_1 = arith.constant 0 : i32
    return %c0_i32, %c0_i32_0 : i32, i32
  }
  func.func @transform_4(%arg0: i32) -> (i32, i32) {
    %c0_i32 = arith.constant 0 : i32
    %c0_i32_0 = arith.constant 0 : i32
    return %arg0, %c0_i32 : i32, i32
  }
}

module attributes {stable_mosaic.version = 11 : i64} {
  func.func @kernel(%arg0: i32, %arg1: memref<128x128xbf16, #tpu.memory_space<vmem>>, %arg2: memref<128x128xbf16, #tpu.memory_space<vmem>>, %arg3: memref<1x128xf32, #tpu.memory_space<vmem>>, %arg4: memref<1x2x128xf32, #tpu.memory_space<vmem>>) attributes {dimension_semantics = [#tpu.dimension_semantics<parallel>], iteration_bounds = array<i64: 1>, scalar_prefetch = 0 : i64, scratch_operands = 0 : i64, tpu.core_type = #tpu.core_type<tc>, window_params = [{transform_indices = @transform_0, window_bounds = array<i64: 128, 128>}, {pipeline_mode = #tpu.pipeline_mode<synchronous>, transform_indices = @transform_1, window_bounds = array<i64: 128, 128>}, {pipeline_mode = #tpu.pipeline_mode<synchronous>, transform_indices = @transform_2, window_bounds = array<i64: 1, 128>}, {transform_indices = @transform_3, window_bounds = array<i64: 1, 2, 128>}]} {
    %c0 = arith.constant 0 : index
    %c0_0 = arith.constant 0 : index
    %0 = vector.load %arg1[%c0, %c0_0] : memref<128x128xbf16, #tpu.memory_space<vmem>>, vector<128x128xbf16>
    %c0_1 = arith.constant 0 : index
    %c0_2 = arith.constant 0 : index
    %1 = vector.load %arg2[%c0_1, %c0_2] : memref<128x128xbf16, #tpu.memory_space<vmem>>, vector<128x128xbf16>
    %cst = arith.constant dense<0.000000e+00> : vector<128x128xf32>
    %2 = tpu.matmul %0, %1, %cst {dimension_numbers = #tpu.dot_dimension_numbers<[1], [0], [0], [1], [0, 0, 1, 1], [], []>} : vector<128x128xbf16>, vector<128x128xbf16>, vector<128x128xf32> -> vector<128x128xf32>
    %c0_3 = arith.constant 0 : index
    %c0_4 = arith.constant 0 : index
    %3 = vector.load %arg3[%c0_3, %c0_4] : memref<1x128xf32, #tpu.memory_space<vmem>>, vector<1x128xf32>
    %4 = vector.broadcast %3 : vector<1x128xf32> to vector<128x128xf32>
    %5 = arith.addf %2, %4 : vector<128x128xf32>
    %cst_5 = arith.constant 0.000000e+00 : f32
    %6 = vector.broadcast %cst_5 : f32 to vector<128x128xf32>
    %7 = arith.maximumf %5, %6 : vector<128x128xf32>
    %cst_6 = arith.constant dense<0.000000e+00> : vector<128xf32>
    %8 = vector.multi_reduction <add>, %7, %cst_6 [0] : vector<128x128xf32> to vector<128xf32>
    %9 = vector.shape_cast %8 : vector<128xf32> to vector<1x128xf32>
    %10 = vector.shape_cast %9 : vector<1x128xf32> to vector<1x1x128xf32>
    %c0_7 = arith.constant 0 : index
    %c0_8 = arith.constant 0 : index
    %c0_9 = arith.constant 0 : index
    %11 = vector.load %arg4[%c0_7, %c0_8, %c0_9] : memref<1x2x128xf32, #tpu.memory_space<vmem>>, vector<1x1x128xf32>
    tpu.vector_store %arg4[%c0_7, %c0_8, %c0_9], %10 {strides = array<i32>} : memref<1x2x128xf32, #tpu.memory_space<vmem>>, vector<1x1x128xf32>,
    %12 = arith.mulf %7, %7 : vector<128x128xf32>
    %cst_10 = arith.constant dense<0.000000e+00> : vector<128xf32>
    %13 = vector.multi_reduction <add>, %12, %cst_10 [0] : vector<128x128xf32> to vector<128xf32>
    %14 = vector.shape_cast %13 : vector<128xf32> to vector<1x128xf32>
    %15 = vector.shape_cast %14 : vector<1x128xf32> to vector<1x1x128xf32>
    %c0_11 = arith.constant 0 : index
    %c1 = arith.constant 1 : index
    %c0_12 = arith.constant 0 : index
    %16 = vector.load %arg4[%c0_11, %c1, %c0_12] : memref<1x2x128xf32, #tpu.memory_space<vmem>>, vector<1x1x128xf32>
    tpu.vector_store %arg4[%c0_11, %c1, %c0_12], %15 {strides = array<i32>} : memref<1x2x128xf32, #tpu.memory_space<vmem>>, vector<1x1x128xf32>,
    return
  }
  func.func @transform_0(%arg0: i32) -> (i32, i32) {
    %c0_i32 = arith.constant 0 : i32
    %c0_i32_0 = arith.constant 0 : i32
    return %arg0, %c0_i32 : i32, i32
  }
  func.func @transform_1(%arg0: i32) -> (i32, i32) {
    %c0_i32 = arith.constant 0 : i32
    %c0_i32_0 = arith.constant 0 : i32
    %c0_i32_1 = arith.constant 0 : i32
    return %c0_i32, %c0_i32_0 : i32, i32
  }
  func.func @transform_2(%arg0: i32) -> (i32, i32) {
    %c0_i32 = arith.constant 0 : i32
    %c0_i32_0 = arith.constant 0 : i32
    %c0_i32_1 = arith.constant 0 : i32
    return %c0_i32, %c0_i32_0 : i32, i32
  }
  func.func @transform_3(%arg0: i32) -> (i32, i32, i32) {
    %c0_i32 = arith.constant 0 : i32
    %c0_i32_0 = arith.constant 0 : i32
    %c0_i32_1 = arith.constant 0 : i32
    return %arg0, %c0_i32, %c0_i32_0 : i32, i32, i32
  }
}

module attributes {stable_mosaic.version = 11 : i64} {
  func.func @kernel(%arg0: i32, %arg1: memref<128x128xbf16, #tpu.memory_space<vmem>>, %arg2: memref<128x128xbf16, #tpu.memory_space<vmem>>, %arg3: memref<1x128xf32, #tpu.memory_space<vmem>>, %arg4: memref<2x128xf32, #tpu.memory_space<vmem>>, %arg5: memref<128x128xf32, #tpu.memory_space<vmem>>) attributes {dimension_semantics = [#tpu.dimension_semantics<parallel>], iteration_bounds = array<i64: 1>, scalar_prefetch = 0 : i64, scratch_operands = 0 : i64, tpu.core_type = #tpu.core_type<tc>, window_params = [{transform_indices = @transform_0, window_bounds = array<i64: 128, 128>}, {pipeline_mode = #tpu.pipeline_mode<synchronous>, transform_indices = @transform_1, window_bounds = array<i64: 128, 128>}, {pipeline_mode = #tpu.pipeline_mode<synchronous>, transform_indices = @transform_2, window_bounds = array<i64: 1, 128>}, {pipeline_mode = #tpu.pipeline_mode<synchronous>, transform_indices = @transform_3, window_bounds = array<i64: 2, 128>}, {transform_indices = @transform_4, window_bounds = array<i64: 128, 128>}]} {
    %c0 = arith.constant 0 : index
    %c0_0 = arith.constant 0 : index
    %0 = vector.load %arg1[%c0, %c0_0] : memref<128x128xbf16, #tpu.memory_space<vmem>>, vector<128x128xbf16>
    %c0_1 = arith.constant 0 : index
    %c0_2 = arith.constant 0 : index
    %1 = vector.load %arg2[%c0_1, %c0_2] : memref<128x128xbf16, #tpu.memory_space<vmem>>, vector<128x128xbf16>
    %cst = arith.constant dense<0.000000e+00> : vector<128x128xf32>
    %2 = tpu.matmul %0, %1, %cst {dimension_numbers = #tpu.dot_dimension_numbers<[1], [0], [0], [1], [0, 0, 1, 1], [], []>} : vector<128x128xbf16>, vector<128x128xbf16>, vector<128x128xf32> -> vector<128x128xf32>
    %c0_3 = arith.constant 0 : index
    %c0_4 = arith.constant 0 : index
    %3 = vector.load %arg3[%c0_3, %c0_4] : memref<1x128xf32, #tpu.memory_space<vmem>>, vector<1x128xf32>
    %4 = vector.broadcast %3 : vector<1x128xf32> to vector<128x128xf32>
    %5 = arith.addf %2, %4 : vector<128x128xf32>
    %cst_5 = arith.constant 0.000000e+00 : f32
    %6 = vector.broadcast %cst_5 : f32 to vector<128x128xf32>
    %7 = arith.maximumf %5, %6 : vector<128x128xf32>
    %c0_6 = arith.constant 0 : index
    %c0_7 = arith.constant 0 : index
    %8 = vector.load %arg4[%c0_6, %c0_7] : memref<2x128xf32, #tpu.memory_space<vmem>>, vector<1x128xf32>
    %9 = vector.broadcast %8 : vector<1x128xf32> to vector<128x128xf32>
    %10 = arith.mulf %7, %9 : vector<128x128xf32>
    %c1 = arith.constant 1 : index
    %c0_8 = arith.constant 0 : index
    %11 = vector.load %arg4[%c1, %c0_8] : memref<2x128xf32, #tpu.memory_space<vmem>>, vector<1x128xf32>
    %12 = vector.broadcast %11 : vector<1x128xf32> to vector<128x128xf32>
    %13 = arith.addf %10, %12 : vector<128x128xf32>
    %c0_9 = arith.constant 0 : index
    %c0_10 = arith.constant 0 : index
    %14 = vector.load %arg5[%c0_9, %c0_10] : memref<128x128xf32, #tpu.memory_space<vmem>>, vector<128x128xf32>
    tpu.vector_store %arg5[%c0_9, %c0_10], %13 {strides = array<i32>} : memref<128x128xf32, #tpu.memory_space<vmem>>, vector<128x128xf32>,
    return
  }
  func.func @transform_0(%arg0: i32) -> (i32, i32) {
    %c0_i32 = arith.constant 0 : i32
    %c0_i32_0 = arith.constant 0 : i32
    return %arg0, %c0_i32 : i32, i32
  }
  func.func @transform_1(%arg0: i32) -> (i32, i32) {
    %c0_i32 = arith.constant 0 : i32
    %c0_i32_0 = arith.constant 0 : i32
    %c0_i32_1 = arith.constant 0 : i32
    return %c0_i32, %c0_i32_0 : i32, i32
  }
  func.func @transform_2(%arg0: i32) -> (i32, i32) {
    %c0_i32 = arith.constant 0 : i32
    %c0_i32_0 = arith.constant 0 : i32
    %c0_i32_1 = arith.constant 0 : i32
    return %c0_i32, %c0_i32_0 : i32, i32
  }
  func.func @transform_3(%arg0: i32) -> (i32, i32) {
    %c0_i32 = arith.constant 0 : i32
    %c0_i32_0 = arith.constant 0 : i32
    %c0_i32_1 = arith.constant 0 : i32
    return %c0_i32, %c0_i32_0 : i32, i32
  }
  func.func @transform_4(%arg0: i32) -> (i32, i32) {
    %c0_i32 = arith.constant 0 : i32
    %c0_i32_0 = arith.constant 0 : i32
    return %arg0, %c0_i32 : i32, i32
  }
}

</mosaic_0001>

<bundles_post_ra>
// kernel: convolution_block_forward.4
= control target key start
LH: loop header
LB: loop body
LE: loop exit
PB: predicated region body
PF: predicated region fallthrough
CT: control target
= control target key end

     0   :  { %s1407_s1 = inlined_call_operand.vmem [shape: bf16[128,128], index: 1, kind: input, shape index: {}]   ;;  %s1408_s0 = inlined_call_operand.vmem [shape: bf16[512,128], index: 0, kind: input, shape index: {}]   ;;  %s1409_s2 = inlined_call_operand.vmem [shape: f32[1,128], index: 2, kind: input, shape index: {}]   ;;  %s1410_s3 = inlined_call_operand.vmem [shape: f32[1,2,128], index: 3, kind: output, shape index: {}]  }
   0x1   :  { %v1080_v0 = vld [vmem:[%s1407_s1 + $0x38] sm:$0xff]   ;;  %v1081_v1 = vld [vmem:[%s1407_s1 + $0x30] sm:$0xff]   ;;  %v1082_v2 = vld [vmem:[%s1407_s1 + $0x28] sm:$0xff]  }
   0x2   :  { %984 = vmatprep.subr.bf16.mxu0 %v1080_v0  ;;  %1064 = vmatprep.subr.bf16.mxu1 %v1080_v0  ;;  %v1083_v3 = vld [vmem:[%s1407_s1 + $0x20] sm:$0xff]   ;;  %v1084_v5 = vld [vmem:[%s1407_s1 + $0x18] sm:$0xff]   ;;  %v1085_v6 = vld [vmem:[%s1407_s1 + $0x10] sm:$0xff]  }
   0x3   :  { %985 = vmatpush3.bf16.msra.mxu0 %v1080_v0  ;;  %1072 = vmatpush3.bf16.msra.mxu1 %v1080_v0  ;;  %v1088_v4 = vld [vmem:[%s1408_s0] sm:$0xff]   ;;  %v1086_v7 = vld [vmem:[%s1407_s1 + $0x8] sm:$0xff]   ;;  %v1090_v11 = vld [vmem:[%s1408_s0 + $0x10] sm:$0xff]  }
   0x4   :  { %986 = vmatprep.subr.bf16.mxu0 %v1081_v1  ;;  %1065 = vmatprep.subr.bf16.mxu1 %v1081_v1  ;;  %v1087_v8 = vld [vmem:[%s1407_s1] sm:$0xff]   ;;  %v1089_v10 = vld [vmem:[%s1408_s0 + $0x8] sm:$0xff]   ;;  %v1106_v13 = vld [vmem:[%s1408_s0 + $0x90] sm:$0xff]  }
   0x5   :  { %1000 = vmatprep.mubr.bf16.mxu0 %v1088_v4  ;;  %v1104_v9 = vld [vmem:[%s1408_s0 + $0x80] sm:$0xff]   ;;  %v1105_v12 = vld [vmem:[%s1408_s0 + $0x88] sm:$0xff]   ;;  %v1091_v14 = vld [vmem:[%s1408_s0 + $0x18] sm:$0xff]  }
   0x6   :  { %1032 = vmatprep.mubr.bf16.mxu1 %v1104_v9  ;;  %v1092_v15 = vld [vmem:[%s1408_s0 + $0x20] sm:$0xff]   ;;  %v1107_v16 = vld [vmem:[%s1408_s0 + $0x98] sm:$0xff]   ;;  %v1093_v18 = vld [vmem:[%s1408_s0 + $0x28] sm:$0xff]  }
   0x7   :  { %987 = vmatpush3.bf16.msra.mxu0 %v1081_v1  ;;  %1073 = vmatpush3.bf16.msra.mxu1 %v1081_v1  ;;  %v1108_v17 = vld [vmem:[%s1408_s0 + $0xa0] sm:$0xff]   ;;  %v1109_v19 = vld [vmem:[%s1408_s0 + $0xa8] sm:$0xff]   ;;  %v1094_v20 = vld [vmem:[%s1408_s0 + $0x30] sm:$0xff]  }
   0x8   :  { %988 = vmatprep.subr.bf16.mxu0 %v1082_v2  ;;  %1066 = vmatprep.subr.bf16.mxu1 %v1082_v2  ;;  %v1110_v21 = vld [vmem:[%s1408_s0 + $0xb0] sm:$0xff]   ;;  %v1095_v22 = vld [vmem:[%s1408_s0 + $0x38] sm:$0xff]   ;;  %v1096_v24 = vld [vmem:[%s1408_s0 + $0x40] sm:$0xff]  }
   0x9   :  { %v1111_v23 = vld [vmem:[%s1408_s0 + $0xb8] sm:$0xff]   ;;  %v1112_v25 = vld [vmem:[%s1408_s0 + $0xc0] sm:$0xff]   ;;  %v1097_v26 = vld [vmem:[%s1408_s0 + $0x48] sm:$0xff]  }
   0xa   :  { %v1113_v27 = vld [vmem:[%s1408_s0 + $0xc8] sm:$0xff]   ;;  %v1098_v28 = vld [vmem:[%s1408_s0 + $0x50] sm:$0xff]   ;;  %v1099_v30 = vld [vmem:[%s1408_s0 + $0x58] sm:$0xff]  }
   0xb   :  { %989 = vmatpush3.bf16.msra.mxu0 %v1082_v2  ;;  %1074 = vmatpush3.bf16.msra.mxu1 %v1082_v2  ;;  %v1114_v29 = vld [vmem:[%s1408_s0 + $0xd0] sm:$0xff]   ;;  %v1115_v31 = vld [vmem:[%s1408_s0 + $0xd8] sm:$0xff]   ;;  %v1100_v32 = vld [vmem:[%s1408_s0 + $0x60] sm:$0xff]  }
   0xc   :  { %990 = vmatprep.subr.bf16.mxu0 %v1083_v3  ;;  %1067 = vmatprep.subr.bf16.mxu1 %v1083_v3  ;;  %v1116_v33 = vld [vmem:[%s1408_s0 + $0xe0] sm:$0xff]   ;;  %v1101_v34 = vld [vmem:[%s1408_s0 + $0x68] sm:$0xff]   ;;  %v1102_v36 = vld [vmem:[%s1408_s0 + $0x70] sm:$0xff]  }
   0xd   :  { %v1117_v35 = vld [vmem:[%s1408_s0 + $0xe8] sm:$0xff]   ;;  %v1118_v37 = vld [vmem:[%s1408_s0 + $0xf0] sm:$0xff]   ;;  %v1103_v38 = vld [vmem:[%s1408_s0 + $0x78] sm:$0xff]  }
   0xe   :  { %v1119_v39 = vld [vmem:[%s1408_s0 + $0xf8] sm:$0xff]   ;;  %v1265_v42 = vld [vmem:[%s1409_s2] ss:$0 sm:$0xff] }
   0xf   :  { %991 = vmatpush3.bf16.msra.mxu0 %v1083_v3  ;;  %1075 = vmatpush3.bf16.msra.mxu1 %v1083_v3 }
  0x10   :  { %992 = vmatprep.subr.bf16.mxu0 %v1084_v5  ;;  %1068 = vmatprep.subr.bf16.mxu1 %v1084_v5 }
  0x13   :  { %993 = vmatpush3.bf16.msra.mxu0 %v1084_v5  ;;  %1076 = vmatpush3.bf16.msra.mxu1 %v1084_v5 }
  0x14   :  { %994 = vmatprep.subr.bf16.mxu0 %v1085_v6  ;;  %1069 = vmatprep.subr.bf16.mxu1 %v1085_v6 }
  0x17   :  { %995 = vmatpush3.bf16.msra.mxu0 %v1085_v6  ;;  %1077 = vmatpush3.bf16.msra.mxu1 %v1085_v6 }
  0x18   :  { %996 = vmatprep.subr.bf16.mxu0 %v1086_v7  ;;  %1070 = vmatprep.subr.bf16.mxu1 %v1086_v7 }
  0x1b   :  { %997 = vmatpush3.bf16.msra.mxu0 %v1086_v7  ;;  %1078 = vmatpush3.bf16.msra.mxu1 %v1086_v7 }
  0x1c   :  { %998 = vmatprep.subr.bf16.mxu0 %v1087_v8  ;;  %1071 = vmatprep.subr.bf16.mxu1 %v1087_v8 }
  0x1f   :  { %999 = vmatpush3.bf16.msra.mxu0 %v1087_v8  ;;  %1079 = vmatpush3.bf16.msra.mxu1 %v1087_v8 }
  0x22   :  { %1001 = vmatmul.mubr.bf16.vlgmr.msra.gmra.mxu0 %v1089_v10  ;;  %1033 = vmatmul.mubr.bf16.vlgmr.msra.gmra.mxu1 %v1105_v12 }
  0x23   :  { %1004 = vmatprep.mubr.bf16.mxu0 %v1090_v11  ;;  %1036 = vmatprep.mubr.bf16.mxu1 %v1106_v13 }
  0x2a   :  { %1005 = vmatmul.mubr.bf16.gmra.mxu0 %v1091_v14  ;;  %1037 = vmatmul.mubr.bf16.gmra.mxu1 %v1107_v16 }
  0x2b   :  { %1008 = vmatprep.mubr.bf16.mxu0 %v1092_v15  ;;  %1040 = vmatprep.mubr.bf16.mxu1 %v1108_v17 }
  0x32   :  { %1009 = vmatmul.mubr.bf16.gmra.mxu0 %v1093_v18  ;;  %1041 = vmatmul.mubr.bf16.gmra.mxu1 %v1109_v19 }
  0x33   :  { %1012 = vmatprep.mubr.bf16.mxu0 %v1094_v20  ;;  %1044 = vmatprep.mubr.bf16.mxu1 %v1110_v21 }
  0x3a   :  { %1013 = vmatmul.mubr.bf16.gmra.mxu0 %v1095_v22  ;;  %1045 = vmatmul.mubr.bf16.gmra.mxu1 %v1111_v23 }
  0x3b   :  { %1016 = vmatprep.mubr.bf16.mxu0 %v1096_v24  ;;  %1048 = vmatprep.mubr.bf16.mxu1 %v1112_v25 }
  0x42   :  { %1017 = vmatmul.mubr.bf16.gmra.mxu0 %v1097_v26  ;;  %1049 = vmatmul.mubr.bf16.gmra.mxu1 %v1113_v27 }
  0x43   :  { %1020 = vmatprep.mubr.bf16.mxu0 %v1098_v28  ;;  %1052 = vmatprep.mubr.bf16.mxu1 %v1114_v29 }
  0x4a   :  { %1021 = vmatmul.mubr.bf16.gmra.mxu0 %v1099_v30  ;;  %1053 = vmatmul.mubr.bf16.gmra.mxu1 %v1115_v31 }
  0x4b   :  { %1024 = vmatprep.mubr.bf16.mxu0 %v1100_v32  ;;  %1056 = vmatprep.mubr.bf16.mxu1 %v1116_v33 }
  0x52   :  { %1025 = vmatmul.mubr.bf16.gmra.mxu0 %v1101_v34  ;;  %1057 = vmatmul.mubr.bf16.gmra.mxu1 %v1117_v35 }
  0x53   :  { %1028 = vmatprep.mubr.bf16.mxu0 %v1102_v36  ;;  %1060 = vmatprep.mubr.bf16.mxu1 %v1118_v37 }
  0x5a   :  { %1029 = vmatmul.mubr.bf16.gmra.mxu0 %v1103_v38  ;;  %1061 = vmatmul.mubr.bf16.gmra.mxu1 %v1119_v39 }
  0xe2   :  { %v1002_v40 = vpop.f32.mrf.mxu0  ;;  %v1260_v41 = vpop.f32.mrf.mxu1 }
  0xe3   :  { %v385_v47 = vadd.f32 %v1002_v40, %v1265_v42 }
  0xe4   :  { %v376_v43 = vpop.f32.mrf.mxu0  ;;  %v1267_v44 = vpop.f32.mrf.mxu1 }
  0xe5   :  { %v377_v45 = vadd.f32 %v1265_v42, %v376_v43  ;;  %v633_v54 = vmax.f32 %v385_v47, 0.0 }
  0xe6   :  { %v1003_v46 = vpop.f32.mrf.mxu0  ;;  %v1271_v48 = vpop.f32.mrf.mxu1 }
  0xe7   :  { %v388_v49 = vadd.f32 %v1003_v46, %v1265_v42  ;;  %v631_v51 = vmax.f32 %v377_v45, 0.0  ;;  %v767_v1 = vmul.f32 %v633_v54, %v633_v54 }
  0xe8   :  { %v379_v50 = vpop.f32.mrf.mxu0  ;;  %v1275_v56 = vpop.f32.mrf.mxu1 }
  0xe9   :  { %v380_v52 = vadd.f32 %v1265_v42, %v379_v50  ;;  %v634_v57 = vmax.f32 %v388_v49, 0.0  ;;  %v765_v59 = vmul.f32 %v631_v51, %v631_v51 }
  0xea   :  { %v1006_v53 = vpop.f32.mrf.mxu0  ;;  %v1279_v5 = vpop.f32.mrf.mxu1 }
  0xeb   :  { %v632_v55 = vmax.f32 %v380_v52, 0.0  ;;  %v401_v63 = vadd.f32 %v1006_v53, %v1265_v42  ;;  %v768_v6 = vmul.f32 %v634_v57, %v634_v57 }
  0xec   :  { %v392_v58 = vpop.f32.mrf.mxu0  ;;  %v1283_v18 = vpop.f32.mrf.mxu1 }
  0xed   :  { %v695_v60 = vadd.f32 %v632_v55, %v631_v51  ;;  %v766_v61 = vmul.f32 %v632_v55, %v632_v55  ;;  %v393_v62 = vadd.f32 %v1265_v42, %v392_v58  ;;  %v637_v12 = vmax.f32 %v401_v63, 0.0 }
  0xee   :  { %v1007_v0 = vpop.f32.mrf.mxu0  ;;  %v1287_v30 = vpop.f32.mrf.mxu1 }
  0xef   :  { %v696_v2 = vadd.f32 %v695_v60, %v633_v54  ;;  %v829_v3 = vadd.f32 %v766_v61, %v765_v59  ;;  %v635_v4 = vmax.f32 %v393_v62, 0.0  ;;  %v404_v10 = vadd.f32 %v1007_v0, %v1265_v42 }
  0xf0   :  { %v395_v7 = vpop.f32.mrf.mxu0  ;;  %v771_v27 = vmul.f32 %v637_v12, %v637_v12  ;;  %v1291_v47 = vpop.f32.mrf.mxu1 }
  0xf1   :  { %v830_v8 = vadd.f32 %v829_v3, %v767_v1  ;;  %v697_v9 = vadd.f32 %v696_v2, %v634_v57  ;;  %v396_v11 = vadd.f32 %v1265_v42, %v395_v7  ;;  %v769_v15 = vmul.f32 %v635_v4, %v635_v4 }
  0xf2   :  { %v1010_v13 = vpop.f32.mrf.mxu0  ;;  %v638_v21 = vmax.f32 %v404_v10, 0.0  ;;  %v1294_v61 = vpop.f32.mrf.mxu1 }
  0xf3   :  { %v698_v14 = vadd.f32 %v697_v9, %v635_v4  ;;  %v831_v16 = vadd.f32 %v830_v8, %v768_v6  ;;  %v636_v17 = vmax.f32 %v396_v11, 0.0  ;;  %v417_v24 = vadd.f32 %v1010_v13, %v1265_v42 }
  0xf4   :  { %v408_v19 = vpop.f32.mrf.mxu0  ;;  %v772_v34 = vmul.f32 %v638_v21, %v638_v21  ;;  %v1299_v10 = vpop.f32.mrf.mxu1 }
  0xf5   :  { %v832_v20 = vadd.f32 %v831_v16, %v769_v15  ;;  %v699_v22 = vadd.f32 %v698_v14, %v636_v17  ;;  %v770_v23 = vmul.f32 %v636_v17, %v636_v17  ;;  %v409_v25 = vadd.f32 %v1265_v42, %v408_v19 }
  0xf6   :  { %v1011_v26 = vpop.f32.mrf.mxu0  ;;  %v641_v38 = vmax.f32 %v417_v24, 0.0 }
  0xf7   :  { %v700_v28 = vadd.f32 %v699_v22, %v637_v12  ;;  %v833_v29 = vadd.f32 %v832_v20, %v770_v23  ;;  %v639_v31 = vmax.f32 %v409_v25, 0.0  ;;  %v420_v32 = vadd.f32 %v1011_v26, %v1265_v42  ;;  %v1303_v22 = vpop.f32.mrf.mxu1 }
  0xf8   :  { %v411_v33 = vpop.f32.mrf.mxu0  ;;  %v775_v57 = vmul.f32 %v641_v38, %v641_v38 }
  0xf9   :  { %v834_v35 = vadd.f32 %v833_v29, %v771_v27  ;;  %v701_v36 = vadd.f32 %v700_v28, %v638_v21  ;;  %v412_v37 = vadd.f32 %v1265_v42, %v411_v33  ;;  %v773_v43 = vmul.f32 %v639_v31, %v639_v31 }
  0xfa   :  { %v1014_v39 = vpop.f32.mrf.mxu0  ;;  %v642_v49 = vmax.f32 %v420_v32, 0.0 }
  0xfb   :  { %v702_v40 = vadd.f32 %v701_v36, %v639_v31  ;;  %v835_v45 = vadd.f32 %v834_v35, %v772_v34  ;;  %v640_v46 = vmax.f32 %v412_v37, 0.0  ;;  %v433_v62 = vadd.f32 %v1014_v39, %v1265_v42  ;;  %v1307_v37 = vpop.f32.mrf.mxu1 }
  0xfc   :  { %v424_v50 = vpop.f32.mrf.mxu0  ;;  %v776_v0 = vmul.f32 %v642_v49, %v642_v49 }
  0xfd   :  { %v836_v51 = vadd.f32 %v835_v45, %v773_v43  ;;  %v703_v52 = vadd.f32 %v702_v40, %v640_v46  ;;  %v774_v53 = vmul.f32 %v640_v46, %v640_v46  ;;  %v425_v54 = vadd.f32 %v1265_v42, %v424_v50 }
  0xfe   :  { %v1015_v55 = vpop.f32.mrf.mxu0  ;;  %v645_v11 = vmax.f32 %v433_v62, 0.0 }
  0xff   :  { %v704_v58 = vadd.f32 %v703_v52, %v641_v38  ;;  %v837_v59 = vadd.f32 %v836_v51, %v774_v53  ;;  %v643_v60 = vmax.f32 %v425_v54, 0.0  ;;  %v436_v3 = vadd.f32 %v1015_v55, %v1265_v42  ;;  %v1310_v54 = vpop.f32.mrf.mxu1 }
 0x100   :  { %v427_v63 = vpop.f32.mrf.mxu0  ;;  %v779_v23 = vmul.f32 %v645_v11, %v645_v11 }
 0x101   :  { %v838_v1 = vadd.f32 %v837_v59, %v775_v57  ;;  %v705_v2 = vadd.f32 %v704_v58, %v642_v49  ;;  %v428_v4 = vadd.f32 %v1265_v42, %v427_v63  ;;  %v777_v8 = vmul.f32 %v643_v60, %v643_v60 }
 0x102   :  { %v1018_v6 = vpop.f32.mrf.mxu0  ;;  %v646_v16 = vmax.f32 %v436_v3, 0.0 }
 0x103   :  { %v706_v7 = vadd.f32 %v705_v2, %v643_v60  ;;  %v839_v9 = vadd.f32 %v838_v1, %v776_v0  ;;  %v644_v12 = vmax.f32 %v428_v4, 0.0  ;;  %v449_v21 = vadd.f32 %v1018_v6, %v1265_v42  ;;  %v1315_v6 = vpop.f32.mrf.mxu1 }
 0x104   :  { %v440_v13 = vpop.f32.mrf.mxu0  ;;  %v780_v29 = vmul.f32 %v646_v16, %v646_v16 }
 0x105   :  { %v840_v14 = vadd.f32 %v839_v9, %v777_v8  ;;  %v441_v15 = vadd.f32 %v1265_v42, %v440_v13  ;;  %v707_v17 = vadd.f32 %v706_v7, %v644_v12  ;;  %v778_v19 = vmul.f32 %v644_v12, %v644_v12 }
 0x106   :  { %v1019_v20 = vpop.f32.mrf.mxu0  ;;  %v649_v35 = vmax.f32 %v449_v21, 0.0  ;;  %v1319_v21 = vpop.f32.mrf.mxu1 }
 0x107   :  { %v708_v24 = vadd.f32 %v707_v17, %v645_v11  ;;  %v841_v25 = vadd.f32 %v840_v14, %v778_v19  ;;  %v647_v26 = vmax.f32 %v441_v15, 0.0  ;;  %v452_v33 = vadd.f32 %v1019_v20, %v1265_v42 }
 0x108   :  { %v443_v27 = vpop.f32.mrf.mxu0  ;;  %v783_v53 = vmul.f32 %v649_v35, %v649_v35 }
 0x109   :  { %v444_v28 = vadd.f32 %v1265_v42, %v443_v27  ;;  %v842_v31 = vadd.f32 %v841_v25, %v779_v23  ;;  %v709_v32 = vadd.f32 %v708_v24, %v646_v16  ;;  %v781_v39 = vmul.f32 %v647_v26, %v647_v26 }
 0x10a   :  { %v1022_v34 = vpop.f32.mrf.mxu0  ;;  %v650_v50 = vmax.f32 %v452_v33, 0.0 }
 0x10b   :  { %v648_v36 = vmax.f32 %v444_v28, 0.0  ;;  %v710_v38 = vadd.f32 %v709_v32, %v647_v26  ;;  %v843_v40 = vadd.f32 %v842_v31, %v780_v29  ;;  %v465_v58 = vadd.f32 %v1022_v34, %v1265_v42 }
 0x10c   :  { %v456_v43 = vpop.f32.mrf.mxu0  ;;  %v784_v63 = vmul.f32 %v650_v50, %v650_v50 }
 0x10d   :  { %v782_v45 = vmul.f32 %v648_v36, %v648_v36  ;;  %v457_v46 = vadd.f32 %v1265_v42, %v456_v43  ;;  %v844_v49 = vadd.f32 %v843_v40, %v781_v39  ;;  %v711_v51 = vadd.f32 %v710_v38, %v648_v36  ;;  %v1323_v38 = vpop.f32.mrf.mxu1 }
 0x10e   :  { %v1023_v52 = vpop.f32.mrf.mxu0  ;;  %v653_v7 = vmax.f32 %v465_v58, 0.0 }
 0x10f   :  { %v712_v55 = vadd.f32 %v711_v51, %v649_v35  ;;  %v845_v57 = vadd.f32 %v844_v49, %v782_v45  ;;  %v651_v59 = vmax.f32 %v457_v46, 0.0  ;;  %v468_v2 = vadd.f32 %v1023_v52, %v1265_v42 }
 0x110   :  { %v459_v60 = vpop.f32.mrf.mxu0  ;;  %v787_v23 = vmul.f32 %v653_v7, %v653_v7 }
 0x111   :  { %v460_v62 = vadd.f32 %v1265_v42, %v459_v60  ;;  %v846_v0 = vadd.f32 %v845_v57, %v783_v53  ;;  %v713_v1 = vadd.f32 %v712_v55, %v650_v50  ;;  %v785_v9 = vmul.f32 %v651_v59, %v651_v59  ;;  %v1326_v57 = vpop.f32.mrf.mxu1 }
 0x112   :  { %v1026_v3 = vpop.f32.mrf.mxu0  ;;  %v654_v16 = vmax.f32 %v468_v2, 0.0 }
 0x113   :  { %v652_v4 = vmax.f32 %v460_v62, 0.0  ;;  %v714_v8 = vadd.f32 %v713_v1, %v651_v59  ;;  %v847_v11 = vadd.f32 %v846_v0, %v784_v63  ;;  %v481_v20 = vadd.f32 %v1026_v3, %v1265_v42 }
 0x114   :  { %v472_v12 = vpop.f32.mrf.mxu0  ;;  %v788_v29 = vmul.f32 %v654_v16, %v654_v16 }
 0x115   :  { %v786_v13 = vmul.f32 %v652_v4, %v652_v4  ;;  %v473_v14 = vadd.f32 %v1265_v42, %v472_v12  ;;  %v848_v15 = vadd.f32 %v847_v11, %v785_v9  ;;  %v715_v17 = vadd.f32 %v714_v8, %v652_v4  ;;  %v1333_v9 = vpop.f32.mrf.mxu1 }
 0x116   :  { %v1027_v19 = vpop.f32.mrf.mxu0  ;;  %v657_v35 = vmax.f32 %v481_v20, 0.0  ;;  %v508_v20 = vadd.f32 %v1265_v42, %v1275_v56 }
 0x117   :  { %v716_v24 = vadd.f32 %v715_v17, %v653_v7  ;;  %v849_v25 = vadd.f32 %v848_v15, %v786_v13  ;;  %v655_v26 = vmax.f32 %v473_v14, 0.0  ;;  %v484_v33 = vadd.f32 %v1027_v19, %v1265_v42 }
 0x118   :  { %v475_v27 = vpop.f32.mrf.mxu0  ;;  %v791_v55 = vmul.f32 %v657_v35, %v657_v35  ;;  %v505_v7 = vadd.f32 %v1265_v42, %v1267_v44 }
 0x119   :  { %v476_v28 = vadd.f32 %v1265_v42, %v475_v27  ;;  %v850_v31 = vadd.f32 %v849_v25, %v787_v23  ;;  %v717_v32 = vadd.f32 %v716_v24, %v654_v16  ;;  %v789_v40 = vmul.f32 %v655_v26, %v655_v26  ;;  %v1339_v24 = vpop.f32.mrf.mxu1 }
 0x11a   :  { %v1030_v34 = vpop.f32.mrf.mxu0  ;;  %v658_v51 = vmax.f32 %v484_v33, 0.0  ;;  %v513_v23 = vadd.f32 %v1260_v41, %v1265_v42  ;;  %v663_v25 = vmax.f32 %v505_v7, 0.0  ;;  %v521_v41 = vadd.f32 %v1265_v42, %v1283_v18 }
 0x11b   :  { %v656_v36 = vmax.f32 %v476_v28, 0.0  ;;  %v718_v39 = vadd.f32 %v717_v32, %v655_v26  ;;  %v851_v43 = vadd.f32 %v850_v31, %v788_v29  ;;  %v497_v60 = vadd.f32 %v1030_v34, %v1265_v42 }
 0x11c   :  { %v488_v45 = vpop.f32.mrf.mxu0  ;;  %v792_v1 = vmul.f32 %v658_v51, %v658_v51  ;;  %v516_v28 = vadd.f32 %v1271_v48, %v1265_v42  ;;  %v664_v32 = vmax.f32 %v508_v20, 0.0  ;;  %v665_v34 = vmax.f32 %v513_v23, 0.0 }
 0x11d   :  { %v790_v46 = vmul.f32 %v656_v36, %v656_v36  ;;  %v489_v49 = vadd.f32 %v1265_v42, %v488_v45  ;;  %v852_v50 = vadd.f32 %v851_v43, %v789_v40  ;;  %v719_v52 = vadd.f32 %v718_v39, %v656_v36 }
 0x11e   :  { %v1031_v53 = vpop.f32.mrf.mxu0  ;;  %v661_v11 = vmax.f32 %v497_v60, 0.0  ;;  %v797_v56 = vmul.f32 %v663_v25, %v663_v25  ;;  %v666_v40 = vmax.f32 %v516_v28, 0.0  ;;  %v798_v45 = vmul.f32 %v664_v32, %v664_v32 }
 0x11f   :  { %v720_v58 = vadd.f32 %v719_v52, %v657_v35  ;;  %v853_v59 = vadd.f32 %v852_v50, %v790_v46  ;;  %v659_v62 = vmax.f32 %v489_v49, 0.0  ;;  %v500_v4 = vadd.f32 %v1031_v53, %v1265_v42  ;;  %v1343_v35 = vpop.f32.mrf.mxu1 }
 0x120   :  { %v491_v63 = vpop.f32.mrf.mxu0  ;;  %v795_v44 = vmul.f32 %v661_v11, %v661_v11  ;;  %v524_v48 = vadd.f32 %v1265_v42, %v1291_v47  ;;  %v529_v49 = vadd.f32 %v1279_v5, %v1265_v42  ;;  %v800_v18 = vmul.f32 %v666_v40, %v666_v40 }
 0x121   :  { %v492_v0 = vadd.f32 %v1265_v42, %v491_v63  ;;  %v854_v2 = vadd.f32 %v853_v59, %v791_v55  ;;  %v721_v3 = vadd.f32 %v720_v58, %v658_v51  ;;  %v793_v13 = vmul.f32 %v659_v62, %v659_v62  ;;  %v1351_v50 = vpop.f32.mrf.mxu1 }
 0x122   :  { %v662_v17 = vmax.f32 %v500_v4, 0.0  ;;  %v799_v51 = vmul.f32 %v665_v34, %v665_v34  ;;  %v667_v55 = vmax.f32 %v521_v41, 0.0  ;;  %v532_v58 = vadd.f32 %v1287_v30, %v1265_v42 }
 0x123   :  { %v660_v8 = vmax.f32 %v492_v0, 0.0  ;;  %v722_v12 = vadd.f32 %v721_v3, %v659_v62  ;;  %v855_v14 = vadd.f32 %v854_v2, %v792_v1  ;;  %v668_v62 = vmax.f32 %v524_v48, 0.0  ;;  %v1355_v0 = vpop.f32.mrf.mxu1 }
 0x124   :  { %v796_v29 = vmul.f32 %v662_v17, %v662_v17  ;;  %v669_v63 = vmax.f32 %v529_v49, 0.0  ;;  %v801_v1 = vmul.f32 %v667_v55, %v667_v55  ;;  %v537_v5 = vadd.f32 %v1265_v42, %v1299_v10 }
 0x125   :  { %v794_v15 = vmul.f32 %v660_v8, %v660_v8  ;;  %v856_v16 = vadd.f32 %v855_v14, %v793_v13  ;;  %v723_v19 = vadd.f32 %v722_v12, %v660_v8  ;;  %v670_v3 = vmax.f32 %v532_v58, 0.0  ;;  %v1363_v12 = vpop.f32.mrf.mxu1 }
 0x126   :  { %v802_v8 = vmul.f32 %v668_v62, %v668_v62  ;;  %v540_v30 = vadd.f32 %v1265_v42, %v1307_v37  ;;  %v803_v13 = vmul.f32 %v669_v63, %v669_v63 }
 0x127   :  { %v724_v26 = vadd.f32 %v723_v19, %v661_v11  ;;  %v857_v27 = vadd.f32 %v856_v16, %v794_v15  ;;  %v545_v11 = vadd.f32 %v1294_v61, %v1265_v42  ;;  %v671_v16 = vmax.f32 %v537_v5, 0.0 }
 0x128   :  { %v804_v10 = vmul.f32 %v670_v3, %v670_v3  ;;  %v672_v23 = vmax.f32 %v540_v30, 0.0  ;;  %v553_v61 = vadd.f32 %v1265_v42, %v1315_v6 }
 0x129   :  { %v858_v31 = vadd.f32 %v857_v27, %v795_v44  ;;  %v725_v33 = vadd.f32 %v724_v26, %v662_v17  ;;  %v548_v17 = vadd.f32 %v1303_v22, %v1265_v42  ;;  %v673_v44 = vmax.f32 %v545_v11, 0.0 }
 0x12a   :  { %v805_v37 = vmul.f32 %v671_v16, %v671_v16  ;;  %v561_v22 = vadd.f32 %v1310_v54, %v1265_v42  ;;  %v675_v41 = vmax.f32 %v553_v61, 0.0  ;;  %v569_v54 = vadd.f32 %v1265_v42, %v1333_v9 }
 0x12b   :  { %v726_v36 = vadd.f32 %v725_v33, %v663_v25  ;;  %v859_v39 = vadd.f32 %v858_v31, %v796_v29  ;;  %v587_v25 = vpop.f32.mrf.mxu1  ;;  %v674_v28 = vmax.f32 %v548_v17, 0.0  ;;  %v556_v33 = vadd.f32 %v1265_v42, %v1323_v38 }
 0x12c   :  { %v677_v48 = vmax.f32 %v561_v22, 0.0  ;;  %v809_v38 = vmul.f32 %v675_v41, %v675_v41  ;;  %v588_v17 = vadd.f32 %v1265_v42, %v587_v25 }
 0x12d   :  { %v727_v43 = vadd.f32 %v726_v36, %v664_v32  ;;  %v860_v46 = vadd.f32 %v859_v39, %v797_v56  ;;  %v806_v32 = vmul.f32 %v672_v23, %v672_v23  ;;  %v807_v56 = vmul.f32 %v673_v44, %v673_v44 }
 0x12e   :  { %v808_v6 = vmul.f32 %v674_v28, %v674_v28  ;;  %v684_v61 = vmax.f32 %v588_v17, 0.0 }
 0x12f   :  { %v728_v52 = vadd.f32 %v727_v43, %v665_v34  ;;  %v861_v53 = vadd.f32 %v860_v46, %v798_v45  ;;  %v1373_v34 = vpop.f32.mrf.mxu1  ;;  %v676_v46 = vmax.f32 %v556_v33, 0.0 }
 0x131   :  { %v862_v59 = vadd.f32 %v861_v53, %v799_v51  ;;  %v729_v60 = vadd.f32 %v728_v52, %v666_v40  ;;  %v564_v40 = vadd.f32 %v1319_v21, %v1265_v42  ;;  %v600_v49 = vpop.f32.mrf.mxu1  ;;  %v577_v21 = vadd.f32 %v1326_v57, %v1265_v42 }
 0x132   :  { %v585_v57 = vadd.f32 %v1265_v42, %v1355_v0  ;;  %v601_v33 = vadd.f32 %v1265_v42, %v600_v49 }
 0x133   :  { %v730_v47 = vadd.f32 %v729_v60, %v667_v55  ;;  %v863_v2 = vadd.f32 %v862_v59, %v800_v18  ;;  %v678_v53 = vmax.f32 %v564_v40, 0.0  ;;  %v810_v18 = vmul.f32 %v676_v46, %v676_v46  ;;  %v1059_v60 = vpop.f32.mrf.mxu1 }
 0x134   :  { %v572_v59 = vadd.f32 %v1265_v42, %v1343_v35 }
 0x135   :  { %v864_v4 = vadd.f32 %v863_v2, %v801_v1  ;;  %v731_v7 = vadd.f32 %v730_v47, %v668_v62  ;;  %v811_v62 = vmul.f32 %v677_v48, %v677_v48  ;;  %v679_v1 = vmax.f32 %v569_v54, 0.0 }
 0x136   :  { %v580_v2 = vadd.f32 %v1339_v24, %v1265_v42  ;;  %v812_v5 = vmul.f32 %v678_v53, %v678_v53  ;;  %v593_v24 = vadd.f32 %v1351_v50, %v1265_v42 }
 0x137   :  { %v732_v14 = vadd.f32 %v731_v7, %v669_v63  ;;  %v865_v15 = vadd.f32 %v864_v4, %v802_v8  ;;  %v680_v4 = vmax.f32 %v572_v59, 0.0  ;;  %v681_v7 = vmax.f32 %v577_v21, 0.0  ;;  %v603_v8 = vpop.f32.mrf.mxu1 }
 0x138   :  { %v813_v11 = vmul.f32 %v679_v1, %v679_v1 }
 0x139   :  { %v866_v19 = vadd.f32 %v865_v15, %v803_v13  ;;  %v733_v20 = vadd.f32 %v732_v14, %v670_v3  ;;  %v682_v13 = vmax.f32 %v580_v2, 0.0 }
 0x13b   :  { %v734_v26 = vadd.f32 %v733_v20, %v671_v16  ;;  %v867_v27 = vadd.f32 %v866_v19, %v804_v10  ;;  %v814_v16 = vmul.f32 %v680_v4, %v680_v4  ;;  %v1062_v10 = vpop.f32.mrf.mxu1  ;;  %v815_v19 = vmul.f32 %v681_v7, %v681_v7 }
 0x13c   :  { %v625_v2 = vadd.f32 %v1062_v10, %v1265_v42 }
 0x13d   :  { %v868_v29 = vadd.f32 %v867_v27, %v805_v37  ;;  %v735_v31 = vadd.f32 %v734_v26, %v672_v23  ;;  %v596_v26 = vadd.f32 %v1363_v12, %v1265_v42  ;;  %v816_v37 = vmul.f32 %v682_v13, %v682_v13 }
 0x13e   :  { %v609_v12 = vadd.f32 %v1373_v34, %v1265_v42 }
 0x13f   :  { %v736_v36 = vadd.f32 %v735_v31, %v673_v44  ;;  %v869_v39 = vadd.f32 %v868_v29, %v806_v32  ;;  %v683_v44 = vmax.f32 %v585_v57, 0.0  ;;  %v616_v29 = vpop.f32.mrf.mxu1  ;;  %v686_v50 = vmax.f32 %v596_v26, 0.0 }
 0x141   :  { %v870_v43 = vadd.f32 %v869_v39, %v807_v56  ;;  %v737_v45 = vadd.f32 %v736_v36, %v674_v28  ;;  %v685_v28 = vmax.f32 %v593_v24, 0.0  ;;  %v817_v32 = vmul.f32 %v683_v44, %v683_v44 }
 0x142   :  { %v818_v36 = vmul.f32 %v684_v61, %v684_v61  ;;  %v604_v39 = vadd.f32 %v1265_v42, %v603_v8 }
 0x143   :  { %v738_v51 = vadd.f32 %v737_v45, %v675_v41  ;;  %v871_v52 = vadd.f32 %v870_v43, %v808_v6  ;;  %v1063_v41 = vpop.f32.mrf.mxu1  ;;  %v819_v40 = vmul.f32 %v685_v28, %v685_v28  ;;  %v687_v45 = vmax.f32 %v601_v33, 0.0 }
 0x144   :  { %v688_v49 = vmax.f32 %v604_v39, 0.0 }
 0x145   :  { %v872_v55 = vadd.f32 %v871_v52, %v809_v38  ;;  %v739_v58 = vadd.f32 %v738_v51, %v676_v46  ;;  %v612_v46 = vadd.f32 %v1059_v60, %v1265_v42  ;;  %v689_v52 = vmax.f32 %v609_v12, 0.0  ;;  %v619_v54 = vpop.f32.mrf.mxu1 }
 0x147   :  { %v740_v63 = vadd.f32 %v739_v58, %v677_v48  ;;  %v873_v47 = vadd.f32 %v872_v55, %v810_v18  ;;  %v820_v48 = vmul.f32 %v686_v50, %v686_v50  ;;  %v821_v55 = vmul.f32 %v687_v45, %v687_v45 }
 0x148   :  { %v617_v18 = vadd.f32 %v1265_v42, %v616_v29  ;;  %v690_v59 = vmax.f32 %v612_v46, 0.0 }
 0x149   :  { %v874_v9 = vadd.f32 %v873_v47, %v811_v62  ;;  %v741_v3 = vadd.f32 %v740_v63, %v678_v53  ;;  %v822_v62 = vmul.f32 %v688_v49, %v688_v49  ;;  %v620_v63 = vadd.f32 %v1265_v42, %v619_v54 }
 0x14a   :  { %v823_v47 = vmul.f32 %v689_v52, %v689_v52 }
 0x14b   :  { %v742_v30 = vadd.f32 %v741_v3, %v679_v1  ;;  %v875_v35 = vadd.f32 %v874_v9, %v812_v5  ;;  %v691_v5 = vmax.f32 %v617_v18, 0.0  ;;  %v824_v9 = vmul.f32 %v690_v59, %v690_v59 }
 0x14c   :  { %v692_v8 = vmax.f32 %v620_v63, 0.0 }
 0x14d   :  { %v876_v14 = vadd.f32 %v875_v35, %v813_v11  ;;  %v743_v15 = vadd.f32 %v742_v30, %v680_v4  ;;  %v693_v30 = vmax.f32 %v625_v2, 0.0  ;;  %v825_v35 = vmul.f32 %v691_v5, %v691_v5 }
 0x14f   :  { %v744_v20 = vadd.f32 %v743_v15, %v681_v7  ;;  %v877_v23 = vadd.f32 %v876_v14, %v814_v16  ;;  %v628_v7 = vadd.f32 %v1063_v41, %v1265_v42  ;;  %v826_v16 = vmul.f32 %v692_v8, %v692_v8 }
 0x150   :  { %v827_v17 = vmul.f32 %v693_v30, %v693_v30 }
 0x151   :  { %v878_v27 = vadd.f32 %v877_v23, %v815_v19  ;;  %v745_v0 = vadd.f32 %v744_v20, %v682_v13  ;;  %v694_v14 = vmax.f32 %v628_v7, 0.0 }
 0x153   :  { %v746_v31 = vadd.f32 %v745_v0, %v683_v44  ;;  %v879_v25 = vadd.f32 %v878_v27, %v816_v37  ;;  %v828_v20 = vmul.f32 %v694_v14, %v694_v14 }
 0x155   :  { %v880_v22 = vadd.f32 %v879_v25, %v817_v32  ;;  %v747_v56 = vadd.f32 %v746_v31, %v684_v61 }
 0x157   :  { %v748_v6 = vadd.f32 %v747_v56, %v685_v28  ;;  %v881_v43 = vadd.f32 %v880_v22, %v818_v36 }
 0x159   :  { %v882_v51 = vadd.f32 %v881_v43, %v819_v40  ;;  %v749_v38 = vadd.f32 %v748_v6, %v686_v50 }
 0x15b   :  { %v750_v53 = vadd.f32 %v749_v38, %v687_v45  ;;  %v883_v58 = vadd.f32 %v882_v51, %v820_v48 }
 0x15d   :  { %v884_v34 = vadd.f32 %v883_v58, %v821_v55  ;;  %v751_v21 = vadd.f32 %v750_v53, %v688_v49 }
 0x15f   :  { %v752_v1 = vadd.f32 %v751_v21, %v689_v52  ;;  %v885_v60 = vadd.f32 %v884_v34, %v822_v62 }
 0x161   :  { %v886_v3 = vadd.f32 %v885_v60, %v823_v47  ;;  %v753_v4 = vadd.f32 %v752_v1, %v690_v59 }
 0x163   :  { %v754_v11 = vadd.f32 %v753_v4, %v691_v5  ;;  %v887_v57 = vadd.f32 %v886_v3, %v824_v9 }
 0x165   :  { %v888_v13 = vadd.f32 %v887_v57, %v825_v35  ;;  %v755_v15 = vadd.f32 %v754_v11, %v692_v8 }
 0x167   :  { %v756_v24 = vadd.f32 %v755_v15, %v693_v30  ;;  %v889_v19 = vadd.f32 %v888_v13, %v826_v16 }
 0x169   :  { %v757_v10 = vadd.f32 %v756_v24, %v694_v14  ;;  %v890_v23 = vadd.f32 %v889_v19, %v827_v17 }
 0x16b   :  { %v758_v44 = vrot.slane %v757_v10, 4  ;;  %v891_v26 = vadd.f32 %v890_v23, %v828_v20 }
 0x16d   :  { %v759_v37 = vadd.f32 %v758_v44, %v757_v10  ;;  %v892_v27 = vrot.slane %v891_v26, 4 }
 0x16f   :  { %v760_v42 = vrot.slane %v759_v37, 2  ;;  %v893_v0 = vadd.f32 %v892_v27, %v891_v26 }
 0x171   :  { %v761_v61 = vadd.f32 %v760_v42, %v759_v37  ;;  %v894_v28 = vrot.slane %v893_v0, 2 }
 0x173   :  { %v762_v29 = vrot.slane %v761_v61, 1  ;;  %v895_v31 = vadd.f32 %v894_v28, %v893_v0 }
 0x175   :  { %v763_v32 = vadd.f32 %v762_v29, %v761_v61  ;;  %v896_v25 = vrot.slane %v895_v31, 1 }
 0x177   :  { %764 = vst [vmem:[%s1410_s3] sm:$0x1] %v763_v32  ;;  %v897_v33 = vadd.f32 %v896_v25, %v895_v31 }
 0x179   :  { %898 = vst [vmem:[%s1410_s3 + $0x1] sm:$0x1] %v897_v33 }

// kernel: convolution_block_forward.5
= control target key start
LH: loop header
LB: loop body
LE: loop exit
PB: predicated region body
PF: predicated region fallthrough
CT: control target
= control target key end

     0   :  { %s2146_s1 = inlined_call_operand.vmem [shape: bf16[128,128], index: 1, kind: input, shape index: {}]   ;;  %s2147_s0 = inlined_call_operand.vmem [shape: bf16[512,128], index: 0, kind: input, shape index: {}]   ;;  %s2148_s2 = inlined_call_operand.vmem [shape: f32[1,128], index: 2, kind: input, shape index: {}]   ;;  %s2149_s3 = inlined_call_operand.vmem [shape: f32[2,128], index: 3, kind: input, shape index: {}]   ;;  %s2150_s4 = inlined_call_operand.vmem [shape: bf16[512,128], index: 4, kind: output, shape index: {}]  }
   0x1   :  { %v1658_v0 = vld [vmem:[%s2146_s1 + $0x38] sm:$0xff]   ;;  %v1659_v1 = vld [vmem:[%s2146_s1 + $0x30] sm:$0xff]   ;;  %v1660_v2 = vld [vmem:[%s2146_s1 + $0x28] sm:$0xff]  }
   0x2   :  { %1562 = vmatprep.subr.bf16.mxu0 %v1658_v0  ;;  %1642 = vmatprep.subr.bf16.mxu1 %v1658_v0  ;;  %v1661_v3 = vld [vmem:[%s2146_s1 + $0x20] sm:$0xff]   ;;  %v1662_v6 = vld [vmem:[%s2146_s1 + $0x18] sm:$0xff]   ;;  %v1663_v7 = vld [vmem:[%s2146_s1 + $0x10] sm:$0xff]  }
   0x3   :  { %1563 = vmatpush3.bf16.msra.mxu0 %v1658_v0  ;;  %1650 = vmatpush3.bf16.msra.mxu1 %v1658_v0  ;;  %v1666_v4 = vld [vmem:[%s2147_s0] sm:$0xff]   ;;  %v1664_v8 = vld [vmem:[%s2146_s1 + $0x8] sm:$0xff]   ;;  %v1670_v12 = vld [vmem:[%s2147_s0 + $0x10] sm:$0xff]  }
   0x4   :  { %1564 = vmatprep.subr.bf16.mxu0 %v1659_v1  ;;  %1643 = vmatprep.subr.bf16.mxu1 %v1659_v1  ;;  %v1667_v5 = vld [vmem:[%s2147_s0 + $0x80] sm:$0xff]   ;;  %v1668_v10 = vld [vmem:[%s2147_s0 + $0x8] sm:$0xff]   ;;  %v1671_v13 = vld [vmem:[%s2147_s0 + $0x90] sm:$0xff]  }
   0x5   :  { %1578 = vmatprep.mubr.bf16.mxu0 %v1666_v4  ;;  %1610 = vmatprep.mubr.bf16.mxu1 %v1667_v5  ;;  %v1665_v9 = vld [vmem:[%s2146_s1] sm:$0xff]   ;;  %v1669_v11 = vld [vmem:[%s2147_s0 + $0x88] sm:$0xff]   ;;  %v1672_v14 = vld [vmem:[%s2147_s0 + $0x18] sm:$0xff]  }
   0x6   :  { %v1673_v15 = vld [vmem:[%s2147_s0 + $0x98] sm:$0xff]   ;;  %v1674_v16 = vld [vmem:[%s2147_s0 + $0x20] sm:$0xff]   ;;  %v1676_v18 = vld [vmem:[%s2147_s0 + $0x28] sm:$0xff]  }
   0x7   :  { %1565 = vmatpush3.bf16.msra.mxu0 %v1659_v1  ;;  %1651 = vmatpush3.bf16.msra.mxu1 %v1659_v1  ;;  %v1675_v17 = vld [vmem:[%s2147_s0 + $0xa0] sm:$0xff]   ;;  %v1677_v19 = vld [vmem:[%s2147_s0 + $0xa8] sm:$0xff]   ;;  %v1678_v20 = vld [vmem:[%s2147_s0 + $0x30] sm:$0xff]  }
   0x8   :  { %1566 = vmatprep.subr.bf16.mxu0 %v1660_v2  ;;  %1644 = vmatprep.subr.bf16.mxu1 %v1660_v2  ;;  %v1679_v21 = vld [vmem:[%s2147_s0 + $0xb0] sm:$0xff]   ;;  %v1680_v22 = vld [vmem:[%s2147_s0 + $0x38] sm:$0xff]   ;;  %v1682_v24 = vld [vmem:[%s2147_s0 + $0x40] sm:$0xff]  }
   0x9   :  { %v1681_v23 = vld [vmem:[%s2147_s0 + $0xb8] sm:$0xff]   ;;  %v1683_v25 = vld [vmem:[%s2147_s0 + $0xc0] sm:$0xff]   ;;  %v1684_v26 = vld [vmem:[%s2147_s0 + $0x48] sm:$0xff]  }
   0xa   :  { %v1685_v27 = vld [vmem:[%s2147_s0 + $0xc8] sm:$0xff]   ;;  %v1686_v28 = vld [vmem:[%s2147_s0 + $0x50] sm:$0xff]   ;;  %v1688_v30 = vld [vmem:[%s2147_s0 + $0x58] sm:$0xff]  }
   0xb   :  { %1567 = vmatpush3.bf16.msra.mxu0 %v1660_v2  ;;  %1652 = vmatpush3.bf16.msra.mxu1 %v1660_v2  ;;  %v1687_v29 = vld [vmem:[%s2147_s0 + $0xd0] sm:$0xff]   ;;  %v1689_v31 = vld [vmem:[%s2147_s0 + $0xd8] sm:$0xff]   ;;  %v1690_v32 = vld [vmem:[%s2147_s0 + $0x60] sm:$0xff]  }
   0xc   :  { %1568 = vmatprep.subr.bf16.mxu0 %v1661_v3  ;;  %1645 = vmatprep.subr.bf16.mxu1 %v1661_v3  ;;  %v1691_v33 = vld [vmem:[%s2147_s0 + $0xe0] sm:$0xff]   ;;  %v1692_v34 = vld [vmem:[%s2147_s0 + $0x68] sm:$0xff]   ;;  %v1694_v36 = vld [vmem:[%s2147_s0 + $0x70] sm:$0xff]  }
   0xd   :  { %v1693_v35 = vld [vmem:[%s2147_s0 + $0xe8] sm:$0xff]   ;;  %v1695_v37 = vld [vmem:[%s2147_s0 + $0xf0] sm:$0xff]   ;;  %v1696_v38 = vld [vmem:[%s2147_s0 + $0x78] sm:$0xff]  }
   0xe   :  { %v1697_v39 = vld [vmem:[%s2147_s0 + $0xf8] sm:$0xff]   ;;  %v1846_v40 = vld [vmem:[%s2148_s2] ss:$0 sm:$0xff]  ;;  %v1860_v52 = vld [vmem:[%s2149_s3 + $0x1] ss:$0 sm:$0xff] }
   0xf   :  { %1569 = vmatpush3.bf16.msra.mxu0 %v1661_v3  ;;  %1653 = vmatpush3.bf16.msra.mxu1 %v1661_v3  ;;  %v1853_v45 = vld [vmem:[%s2149_s3] ss:$0 sm:$0xff] }
  0x10   :  { %1570 = vmatprep.subr.bf16.mxu0 %v1662_v6  ;;  %1646 = vmatprep.subr.bf16.mxu1 %v1662_v6 }
  0x13   :  { %1571 = vmatpush3.bf16.msra.mxu0 %v1662_v6  ;;  %1654 = vmatpush3.bf16.msra.mxu1 %v1662_v6 }
  0x14   :  { %1572 = vmatprep.subr.bf16.mxu0 %v1663_v7  ;;  %1647 = vmatprep.subr.bf16.mxu1 %v1663_v7 }
  0x17   :  { %1573 = vmatpush3.bf16.msra.mxu0 %v1663_v7  ;;  %1655 = vmatpush3.bf16.msra.mxu1 %v1663_v7 }
  0x18   :  { %1574 = vmatprep.subr.bf16.mxu0 %v1664_v8  ;;  %1648 = vmatprep.subr.bf16.mxu1 %v1664_v8 }
  0x1b   :  { %1575 = vmatpush3.bf16.msra.mxu0 %v1664_v8  ;;  %1656 = vmatpush3.bf16.msra.mxu1 %v1664_v8 }
  0x1c   :  { %1576 = vmatprep.subr.bf16.mxu0 %v1665_v9  ;;  %1649 = vmatprep.subr.bf16.mxu1 %v1665_v9 }
  0x1f   :  { %1577 = vmatpush3.bf16.msra.mxu0 %v1665_v9  ;;  %1657 = vmatpush3.bf16.msra.mxu1 %v1665_v9 }
  0x22   :  { %1579 = vmatmul.mubr.bf16.vlgmr.msra.gmra.mxu0 %v1668_v10  ;;  %1611 = vmatmul.mubr.bf16.vlgmr.msra.gmra.mxu1 %v1669_v11 }
  0x23   :  { %1582 = vmatprep.mubr.bf16.mxu0 %v1670_v12  ;;  %1614 = vmatprep.mubr.bf16.mxu1 %v1671_v13 }
  0x2a   :  { %1583 = vmatmul.mubr.bf16.gmra.mxu0 %v1672_v14  ;;  %1615 = vmatmul.mubr.bf16.gmra.mxu1 %v1673_v15 }
  0x2b   :  { %1586 = vmatprep.mubr.bf16.mxu0 %v1674_v16  ;;  %1618 = vmatprep.mubr.bf16.mxu1 %v1675_v17 }
  0x32   :  { %1587 = vmatmul.mubr.bf16.gmra.mxu0 %v1676_v18  ;;  %1619 = vmatmul.mubr.bf16.gmra.mxu1 %v1677_v19 }
  0x33   :  { %1590 = vmatprep.mubr.bf16.mxu0 %v1678_v20  ;;  %1622 = vmatprep.mubr.bf16.mxu1 %v1679_v21 }
  0x3a   :  { %1591 = vmatmul.mubr.bf16.gmra.mxu0 %v1680_v22  ;;  %1623 = vmatmul.mubr.bf16.gmra.mxu1 %v1681_v23 }
  0x3b   :  { %1594 = vmatprep.mubr.bf16.mxu0 %v1682_v24  ;;  %1626 = vmatprep.mubr.bf16.mxu1 %v1683_v25 }
  0x42   :  { %1595 = vmatmul.mubr.bf16.gmra.mxu0 %v1684_v26  ;;  %1627 = vmatmul.mubr.bf16.gmra.mxu1 %v1685_v27 }
  0x43   :  { %1598 = vmatprep.mubr.bf16.mxu0 %v1686_v28  ;;  %1630 = vmatprep.mubr.bf16.mxu1 %v1687_v29 }
  0x4a   :  { %1599 = vmatmul.mubr.bf16.gmra.mxu0 %v1688_v30  ;;  %1631 = vmatmul.mubr.bf16.gmra.mxu1 %v1689_v31 }
  0x4b   :  { %1602 = vmatprep.mubr.bf16.mxu0 %v1690_v32  ;;  %1634 = vmatprep.mubr.bf16.mxu1 %v1691_v33 }
  0x52   :  { %1603 = vmatmul.mubr.bf16.gmra.mxu0 %v1692_v34  ;;  %1635 = vmatmul.mubr.bf16.gmra.mxu1 %v1693_v35 }
  0x53   :  { %1606 = vmatprep.mubr.bf16.mxu0 %v1694_v36  ;;  %1638 = vmatprep.mubr.bf16.mxu1 %v1695_v37 }
  0x5a   :  { %1607 = vmatmul.mubr.bf16.gmra.mxu0 %v1696_v38  ;;  %1639 = vmatmul.mubr.bf16.gmra.mxu1 %v1697_v39 }
  0xe2   :  { %v1580_v41 = vpop.f32.mrf.mxu0  ;;  %v1612_v42 = vpop.f32.mrf.mxu1 }
  0xe3   :  { %v388_v43 = vadd.f32 %v1580_v41, %v1846_v40  ;;  %v516_v44 = vadd.f32 %v1612_v42, %v1846_v40 }
  0xe4   :  { %v379_v46 = vpop.f32.mrf.mxu0  ;;  %v507_v47 = vpop.f32.mrf.mxu1 }
  0xe5   :  { %v636_v48 = vmax.f32 %v388_v43, 0.0  ;;  %v668_v49 = vmax.f32 %v516_v44, 0.0  ;;  %v380_v50 = vadd.f32 %v1846_v40, %v379_v46  ;;  %v508_v51 = vadd.f32 %v1846_v40, %v507_v47 }
  0xe6   :  { %v1581_v53 = vpop.f32.mrf.mxu0  ;;  %v1613_v54 = vpop.f32.mrf.mxu1 }
  0xe7   :  { %v705_v55 = vmul.f32 %v1853_v45, %v636_v48  ;;  %v737_v56 = vmul.f32 %v1853_v45, %v668_v49  ;;  %v634_v57 = vmax.f32 %v380_v50, 0.0  ;;  %v666_v58 = vmax.f32 %v508_v51, 0.0 }
  0xe8   :  { %v391_v59 = vadd.f32 %v1581_v53, %v1846_v40  ;;  %v519_v60 = vadd.f32 %v1613_v54, %v1846_v40  ;;  %v382_v61 = vpop.f32.mrf.mxu0  ;;  %v510_v62 = vpop.f32.mrf.mxu1 }
  0xe9   :  { %v774_v63 = vadd.f32 %v1860_v52, %v705_v55  ;;  %v806_v0 = vadd.f32 %v1860_v52, %v737_v56  ;;  %v383_v3 = vadd.f32 %v1846_v40, %v382_v61  ;;  %v511_v4 = vadd.f32 %v1846_v40, %v510_v62 }
  0xea   :  { %v637_v1 = vmax.f32 %v391_v59, 0.0  ;;  %v669_v2 = vmax.f32 %v519_v60, 0.0  ;;  %v1584_v5 = vpop.f32.mrf.mxu0  ;;  %v1616_v6 = vpop.f32.mrf.mxu1  ;;  %v703_v7 = vmul.f32 %v1853_v45, %v634_v57  ;;  %v735_v8 = vmul.f32 %v1853_v45, %v666_v58 }
  0xeb   :  { %v404_v9 = vadd.f32 %v1584_v5, %v1846_v40  ;;  %v532_v10 = vadd.f32 %v1616_v6, %v1846_v40  ;;  %v635_v13 = vmax.f32 %v383_v3, 0.0  ;;  %v667_v14 = vmax.f32 %v511_v4, 0.0 }
  0xec   :  { %v706_v11 = vmul.f32 %v1853_v45, %v637_v1  ;;  %v738_v12 = vmul.f32 %v1853_v45, %v669_v2  ;;  %v395_v15 = vpop.f32.mrf.mxu0  ;;  %v523_v16 = vpop.f32.mrf.mxu1  ;;  %v772_v27 = vadd.f32 %v1860_v52, %v703_v7  ;;  %v804_v28 = vadd.f32 %v1860_v52, %v735_v8 }
  0xed   :  { %v640_v17 = vmax.f32 %v404_v9, 0.0  ;;  %v672_v18 = vmax.f32 %v532_v10, 0.0  ;;  %v396_v19 = vadd.f32 %v1846_v40, %v395_v15  ;;  %v524_v20 = vadd.f32 %v1846_v40, %v523_v16 }
  0xee   :  { %v775_v21 = vadd.f32 %v1860_v52, %v706_v11  ;;  %v807_v22 = vadd.f32 %v1860_v52, %v738_v12  ;;  %v704_v23 = vmul.f32 %v1853_v45, %v635_v13  ;;  %v736_v24 = vmul.f32 %v1853_v45, %v667_v14  ;;  %v1585_v25 = vpop.f32.mrf.mxu0  ;;  %v1617_v26 = vpop.f32.mrf.mxu1 }
  0xef   :  { %v638_v29 = vmax.f32 %v396_v19, 0.0  ;;  %v670_v30 = vmax.f32 %v524_v20, 0.0  ;;  %v709_v37 = vmul.f32 %v1853_v45, %v640_v17  ;;  %v741_v38 = vmul.f32 %v1853_v45, %v672_v18 }
  0xf0   :  { %v1339_v31 = vpack.c.bf16 %v775_v21, %v774_v63  ;;  %v1419_v32 = vpack.c.bf16 %v807_v22, %v806_v0  ;;  %v773_v33 = vadd.f32 %v1860_v52, %v704_v23  ;;  %v805_v34 = vadd.f32 %v1860_v52, %v736_v24  ;;  %v398_v35 = vpop.f32.mrf.mxu0  ;;  %v526_v36 = vpop.f32.mrf.mxu1 }
  0xf1   :  { %v407_v42 = vadd.f32 %v1585_v25, %v1846_v40  ;;  %v535_v43 = vadd.f32 %v1617_v26, %v1846_v40  ;;  %v707_v47 = vmul.f32 %v1853_v45, %v638_v29  ;;  %v739_v48 = vmul.f32 %v1853_v45, %v670_v30 }
  0xf2   :  { %1491 = vst [vmem:[%s2150_s4 + $0x8] sm:$0xff] %v1339_v31   ;;  %1507 = vst [vmem:[%s2150_s4 + $0x88] sm:$0xff] %v1419_v32   ;;  %v1334_v39 = vpack.c.bf16 %v773_v33, %v772_v27  ;;  %v1414_v41 = vpack.c.bf16 %v805_v34, %v804_v28  ;;  %v1588_v44 = vpop.f32.mrf.mxu0  ;;  %v1620_v46 = vpop.f32.mrf.mxu1  ;;  %v399_v49 = vadd.f32 %v1846_v40, %v398_v35 }
  0xf3   :  { %v527_v50 = vadd.f32 %v1846_v40, %v526_v36  ;;  %v641_v51 = vmax.f32 %v407_v42, 0.0  ;;  %v673_v53 = vmax.f32 %v535_v43, 0.0  ;;  %v420_v54 = vadd.f32 %v1588_v44, %v1846_v40 }
  0xf4   :  { %1335 = vst [vmem:[%s2150_s4] sm:$0xff] %v1334_v39   ;;  %1506 = vst [vmem:[%s2150_s4 + $0x80] sm:$0xff] %v1414_v41   ;;  %v548_v55 = vadd.f32 %v1620_v46, %v1846_v40  ;;  %v411_v56 = vpop.f32.mrf.mxu0  ;;  %v539_v57 = vpop.f32.mrf.mxu1  ;;  %v639_v58 = vmax.f32 %v399_v49, 0.0  ;;  %v778_v8 = vadd.f32 %v1860_v52, %v709_v37  ;;  %v810_v9 = vadd.f32 %v1860_v52, %v741_v38 }
  0xf5   :  { %v671_v59 = vmax.f32 %v527_v50, 0.0  ;;  %v412_v60 = vadd.f32 %v1846_v40, %v411_v56  ;;  %v540_v61 = vadd.f32 %v1846_v40, %v539_v57  ;;  %v710_v62 = vmul.f32 %v1853_v45, %v641_v51 }
  0xf6   :  { %v742_v63 = vmul.f32 %v1853_v45, %v673_v53  ;;  %v644_v0 = vmax.f32 %v420_v54, 0.0  ;;  %v676_v1 = vmax.f32 %v548_v55, 0.0  ;;  %v1589_v2 = vpop.f32.mrf.mxu0  ;;  %v1621_v3 = vpop.f32.mrf.mxu1  ;;  %v708_v4 = vmul.f32 %v1853_v45, %v639_v58 }
  0xf7   :  { %v740_v5 = vmul.f32 %v1853_v45, %v671_v59  ;;  %v642_v6 = vmax.f32 %v412_v60, 0.0  ;;  %v674_v7 = vmax.f32 %v540_v61, 0.0  ;;  %v779_v10 = vadd.f32 %v1860_v52, %v710_v62 }
  0xf8   :  { %v811_v11 = vadd.f32 %v1860_v52, %v742_v63  ;;  %v414_v12 = vpop.f32.mrf.mxu0  ;;  %v542_v13 = vpop.f32.mrf.mxu1  ;;  %v776_v14 = vadd.f32 %v1860_v52, %v707_v47  ;;  %v808_v15 = vadd.f32 %v1860_v52, %v739_v48  ;;  %v777_v16 = vadd.f32 %v1860_v52, %v708_v4 }
  0xf9   :  { %v809_v17 = vadd.f32 %v1860_v52, %v740_v5  ;;  %v1349_v18 = vpack.c.bf16 %v779_v10, %v778_v8  ;;  %v713_v20 = vmul.f32 %v1853_v45, %v644_v0  ;;  %v745_v21 = vmul.f32 %v1853_v45, %v676_v1 }
  0xfa   :  { %v1429_v19 = vpack.c.bf16 %v811_v11, %v810_v9  ;;  %v1592_v22 = vpop.f32.mrf.mxu0  ;;  %v1624_v23 = vpop.f32.mrf.mxu1  ;;  %v1344_v24 = vpack.c.bf16 %v777_v16, %v776_v14  ;;  %v711_v26 = vmul.f32 %v1853_v45, %v642_v6  ;;  %v743_v27 = vmul.f32 %v1853_v45, %v674_v7 }
  0xfb   :  { %v1424_v25 = vpack.c.bf16 %v809_v17, %v808_v15  ;;  %1493 = vst [vmem:[%s2150_s4 + $0x18] sm:$0xff] %v1349_v18   ;;  %v423_v28 = vadd.f32 %v1589_v2, %v1846_v40  ;;  %v551_v29 = vadd.f32 %v1621_v3, %v1846_v40  ;;  %v415_v30 = vadd.f32 %v1846_v40, %v414_v12 }
  0xfc   :  { %1509 = vst [vmem:[%s2150_s4 + $0x98] sm:$0xff] %v1429_v19   ;;  %v543_v31 = vadd.f32 %v1846_v40, %v542_v13  ;;  %v427_v32 = vpop.f32.mrf.mxu0  ;;  %v555_v33 = vpop.f32.mrf.mxu1  ;;  %1492 = vst [vmem:[%s2150_s4 + $0x10] sm:$0xff] %v1344_v24   ;;  %v436_v34 = vadd.f32 %v1592_v22, %v1846_v40  ;;  %v564_v35 = vadd.f32 %v1624_v23, %v1846_v40 }
  0xfd   :  { %1508 = vst [vmem:[%s2150_s4 + $0x90] sm:$0xff] %v1424_v25   ;;  %v428_v36 = vadd.f32 %v1846_v40, %v427_v32  ;;  %v556_v37 = vadd.f32 %v1846_v40, %v555_v33  ;;  %v645_v38 = vmax.f32 %v423_v28, 0.0  ;;  %v677_v39 = vmax.f32 %v551_v29, 0.0 }
  0xfe   :  { %v643_v41 = vmax.f32 %v415_v30, 0.0  ;;  %v675_v42 = vmax.f32 %v543_v31, 0.0  ;;  %v1593_v43 = vpop.f32.mrf.mxu0  ;;  %v1625_v44 = vpop.f32.mrf.mxu1  ;;  %v648_v46 = vmax.f32 %v436_v34, 0.0  ;;  %v680_v47 = vmax.f32 %v564_v35, 0.0 }
  0xff   :  { %v646_v48 = vmax.f32 %v428_v36, 0.0  ;;  %v678_v49 = vmax.f32 %v556_v37, 0.0  ;;  %v714_v50 = vmul.f32 %v1853_v45, %v645_v38  ;;  %v746_v51 = vmul.f32 %v1853_v45, %v677_v39 }
 0x100   :  { %v712_v53 = vmul.f32 %v1853_v45, %v643_v41  ;;  %v744_v54 = vmul.f32 %v1853_v45, %v675_v42  ;;  %v430_v55 = vpop.f32.mrf.mxu0  ;;  %v558_v56 = vpop.f32.mrf.mxu1  ;;  %v782_v57 = vadd.f32 %v1860_v52, %v713_v20  ;;  %v814_v58 = vadd.f32 %v1860_v52, %v745_v21 }
 0x101   :  { %v780_v59 = vadd.f32 %v1860_v52, %v711_v26  ;;  %v812_v60 = vadd.f32 %v1860_v52, %v743_v27  ;;  %v783_v61 = vadd.f32 %v1860_v52, %v714_v50  ;;  %v815_v62 = vadd.f32 %v1860_v52, %v746_v51 }
 0x102   :  { %v781_v63 = vadd.f32 %v1860_v52, %v712_v53  ;;  %v813_v0 = vadd.f32 %v1860_v52, %v744_v54  ;;  %v1596_v1 = vpop.f32.mrf.mxu0  ;;  %v1628_v2 = vpop.f32.mrf.mxu1  ;;  %v717_v3 = vmul.f32 %v1853_v45, %v648_v46  ;;  %v749_v4 = vmul.f32 %v1853_v45, %v680_v47 }
 0x103   :  { %v715_v5 = vmul.f32 %v1853_v45, %v646_v48  ;;  %v747_v6 = vmul.f32 %v1853_v45, %v678_v49  ;;  %v1359_v7 = vpack.c.bf16 %v783_v61, %v782_v57  ;;  %v1439_v8 = vpack.c.bf16 %v815_v62, %v814_v58 }
 0x104   :  { %v1354_v9 = vpack.c.bf16 %v781_v63, %v780_v59  ;;  %v1434_v10 = vpack.c.bf16 %v813_v0, %v812_v60  ;;  %v443_v11 = vpop.f32.mrf.mxu0  ;;  %v571_v12 = vpop.f32.mrf.mxu1  ;;  %v439_v13 = vadd.f32 %v1593_v43, %v1846_v40  ;;  %v567_v14 = vadd.f32 %v1625_v44, %v1846_v40 }
 0x105   :  { %v431_v15 = vadd.f32 %v1846_v40, %v430_v55  ;;  %v559_v16 = vadd.f32 %v1846_v40, %v558_v56  ;;  %1495 = vst [vmem:[%s2150_s4 + $0x28] sm:$0xff] %v1359_v7   ;;  %1511 = vst [vmem:[%s2150_s4 + $0xa8] sm:$0xff] %v1439_v8   ;;  %v452_v17 = vadd.f32 %v1596_v1, %v1846_v40 }
 0x106   :  { %1494 = vst [vmem:[%s2150_s4 + $0x20] sm:$0xff] %v1354_v9   ;;  %1510 = vst [vmem:[%s2150_s4 + $0xa0] sm:$0xff] %v1434_v10   ;;  %v580_v18 = vadd.f32 %v1628_v2, %v1846_v40  ;;  %v444_v19 = vadd.f32 %v1846_v40, %v443_v11  ;;  %v572_v20 = vadd.f32 %v1846_v40, %v571_v12  ;;  %v1597_v21 = vpop.f32.mrf.mxu0  ;;  %v1629_v22 = vpop.f32.mrf.mxu1  ;;  %v649_v23 = vmax.f32 %v439_v13, 0.0 }
 0x107   :  { %v681_v24 = vmax.f32 %v567_v14, 0.0  ;;  %v647_v25 = vmax.f32 %v431_v15, 0.0  ;;  %v679_v26 = vmax.f32 %v559_v16, 0.0  ;;  %v652_v27 = vmax.f32 %v452_v17, 0.0 }
 0x108   :  { %v684_v28 = vmax.f32 %v580_v18, 0.0  ;;  %v650_v29 = vmax.f32 %v444_v19, 0.0  ;;  %v682_v30 = vmax.f32 %v572_v20, 0.0  ;;  %v446_v31 = vpop.f32.mrf.mxu0  ;;  %v574_v32 = vpop.f32.mrf.mxu1  ;;  %v718_v33 = vmul.f32 %v1853_v45, %v649_v23 }
 0x109   :  { %v750_v34 = vmul.f32 %v1853_v45, %v681_v24  ;;  %v716_v35 = vmul.f32 %v1853_v45, %v647_v25  ;;  %v748_v36 = vmul.f32 %v1853_v45, %v679_v26  ;;  %v786_v37 = vadd.f32 %v1860_v52, %v717_v3 }
 0x10a   :  { %v818_v38 = vadd.f32 %v1860_v52, %v749_v4  ;;  %v784_v39 = vadd.f32 %v1860_v52, %v715_v5  ;;  %v816_v41 = vadd.f32 %v1860_v52, %v747_v6  ;;  %v1600_v42 = vpop.f32.mrf.mxu0  ;;  %v1632_v43 = vpop.f32.mrf.mxu1  ;;  %v787_v44 = vadd.f32 %v1860_v52, %v718_v33 }
 0x10b   :  { %v819_v46 = vadd.f32 %v1860_v52, %v750_v34  ;;  %v785_v47 = vadd.f32 %v1860_v52, %v716_v35  ;;  %v817_v48 = vadd.f32 %v1860_v52, %v748_v36  ;;  %v721_v49 = vmul.f32 %v1853_v45, %v652_v27 }
 0x10c   :  { %v753_v50 = vmul.f32 %v1853_v45, %v684_v28  ;;  %v719_v51 = vmul.f32 %v1853_v45, %v650_v29  ;;  %v751_v53 = vmul.f32 %v1853_v45, %v682_v30  ;;  %v459_v54 = vpop.f32.mrf.mxu0  ;;  %v587_v55 = vpop.f32.mrf.mxu1  ;;  %v1369_v56 = vpack.c.bf16 %v787_v44, %v786_v37 }
 0x10d   :  { %v1449_v57 = vpack.c.bf16 %v819_v46, %v818_v38  ;;  %v1364_v58 = vpack.c.bf16 %v785_v47, %v784_v39  ;;  %v1444_v59 = vpack.c.bf16 %v817_v48, %v816_v41  ;;  %v455_v60 = vadd.f32 %v1597_v21, %v1846_v40 }
 0x10e   :  { %v583_v61 = vadd.f32 %v1629_v22, %v1846_v40  ;;  %v447_v62 = vadd.f32 %v1846_v40, %v446_v31  ;;  %v575_v63 = vadd.f32 %v1846_v40, %v574_v32  ;;  %v1601_v0 = vpop.f32.mrf.mxu0  ;;  %v1633_v1 = vpop.f32.mrf.mxu1  ;;  %1497 = vst [vmem:[%s2150_s4 + $0x38] sm:$0xff] %v1369_v56   ;;  %v468_v2 = vadd.f32 %v1600_v42, %v1846_v40 }
 0x10f   :  { %1513 = vst [vmem:[%s2150_s4 + $0xb8] sm:$0xff] %v1449_v57   ;;  %1496 = vst [vmem:[%s2150_s4 + $0x30] sm:$0xff] %v1364_v58   ;;  %v596_v3 = vadd.f32 %v1632_v43, %v1846_v40  ;;  %v460_v4 = vadd.f32 %v1846_v40, %v459_v54  ;;  %v588_v5 = vadd.f32 %v1846_v40, %v587_v55  ;;  %v653_v6 = vmax.f32 %v455_v60, 0.0 }
 0x110   :  { %1512 = vst [vmem:[%s2150_s4 + $0xb0] sm:$0xff] %v1444_v59   ;;  %v685_v7 = vmax.f32 %v583_v61, 0.0  ;;  %v651_v8 = vmax.f32 %v447_v62, 0.0  ;;  %v683_v9 = vmax.f32 %v575_v63, 0.0  ;;  %v462_v10 = vpop.f32.mrf.mxu0  ;;  %v590_v11 = vpop.f32.mrf.mxu1  ;;  %v656_v12 = vmax.f32 %v468_v2, 0.0 }
 0x111   :  { %v688_v13 = vmax.f32 %v596_v3, 0.0  ;;  %v654_v14 = vmax.f32 %v460_v4, 0.0  ;;  %v686_v15 = vmax.f32 %v588_v5, 0.0  ;;  %v722_v16 = vmul.f32 %v1853_v45, %v653_v6 }
 0x112   :  { %v754_v17 = vmul.f32 %v1853_v45, %v685_v7  ;;  %v720_v18 = vmul.f32 %v1853_v45, %v651_v8  ;;  %v752_v19 = vmul.f32 %v1853_v45, %v683_v9  ;;  %v1604_v20 = vpop.f32.mrf.mxu0  ;;  %v1636_v21 = vpop.f32.mrf.mxu1  ;;  %v790_v22 = vadd.f32 %v1860_v52, %v721_v49 }
 0x113   :  { %v822_v23 = vadd.f32 %v1860_v52, %v753_v50  ;;  %v788_v24 = vadd.f32 %v1860_v52, %v719_v51  ;;  %v820_v25 = vadd.f32 %v1860_v52, %v751_v53  ;;  %v791_v26 = vadd.f32 %v1860_v52, %v722_v16 }
 0x114   :  { %v823_v27 = vadd.f32 %v1860_v52, %v754_v17  ;;  %v789_v28 = vadd.f32 %v1860_v52, %v720_v18  ;;  %v821_v29 = vadd.f32 %v1860_v52, %v752_v19  ;;  %v475_v30 = vpop.f32.mrf.mxu0  ;;  %v603_v31 = vpop.f32.mrf.mxu1  ;;  %v725_v32 = vmul.f32 %v1853_v45, %v656_v12 }
 0x115   :  { %v757_v33 = vmul.f32 %v1853_v45, %v688_v13  ;;  %v723_v34 = vmul.f32 %v1853_v45, %v654_v14  ;;  %v755_v35 = vmul.f32 %v1853_v45, %v686_v15  ;;  %v1379_v36 = vpack.c.bf16 %v791_v26, %v790_v22 }
 0x116   :  { %v1459_v37 = vpack.c.bf16 %v823_v27, %v822_v23  ;;  %v1374_v38 = vpack.c.bf16 %v789_v28, %v788_v24  ;;  %v1454_v39 = vpack.c.bf16 %v821_v29, %v820_v25  ;;  %v1605_v41 = vpop.f32.mrf.mxu0  ;;  %v1637_v42 = vpop.f32.mrf.mxu1  ;;  %v471_v43 = vadd.f32 %v1601_v0, %v1846_v40 }
 0x117   :  { %v599_v44 = vadd.f32 %v1633_v1, %v1846_v40  ;;  %v463_v46 = vadd.f32 %v1846_v40, %v462_v10  ;;  %v591_v47 = vadd.f32 %v1846_v40, %v590_v11  ;;  %1499 = vst [vmem:[%s2150_s4 + $0x48] sm:$0xff] %v1379_v36   ;;  %v484_v48 = vadd.f32 %v1604_v20, %v1846_v40 }
 0x118   :  { %1515 = vst [vmem:[%s2150_s4 + $0xc8] sm:$0xff] %v1459_v37   ;;  %1498 = vst [vmem:[%s2150_s4 + $0x40] sm:$0xff] %v1374_v38   ;;  %v612_v49 = vadd.f32 %v1636_v21, %v1846_v40  ;;  %v476_v50 = vadd.f32 %v1846_v40, %v475_v30  ;;  %v604_v51 = vadd.f32 %v1846_v40, %v603_v31  ;;  %v478_v53 = vpop.f32.mrf.mxu0  ;;  %v606_v54 = vpop.f32.mrf.mxu1  ;;  %v657_v55 = vmax.f32 %v471_v43, 0.0 }
 0x119   :  { %1514 = vst [vmem:[%s2150_s4 + $0xc0] sm:$0xff] %v1454_v39   ;;  %v689_v56 = vmax.f32 %v599_v44, 0.0  ;;  %v655_v57 = vmax.f32 %v463_v46, 0.0  ;;  %v687_v58 = vmax.f32 %v591_v47, 0.0  ;;  %v660_v59 = vmax.f32 %v484_v48, 0.0 }
 0x11a   :  { %v692_v60 = vmax.f32 %v612_v49, 0.0  ;;  %v658_v61 = vmax.f32 %v476_v50, 0.0  ;;  %v690_v62 = vmax.f32 %v604_v51, 0.0  ;;  %v1608_v63 = vpop.f32.mrf.mxu0  ;;  %v1640_v0 = vpop.f32.mrf.mxu1  ;;  %v726_v1 = vmul.f32 %v1853_v45, %v657_v55 }
 0x11b   :  { %v758_v2 = vmul.f32 %v1853_v45, %v689_v56  ;;  %v724_v3 = vmul.f32 %v1853_v45, %v655_v57  ;;  %v756_v4 = vmul.f32 %v1853_v45, %v687_v58  ;;  %v794_v5 = vadd.f32 %v1860_v52, %v725_v32 }
 0x11c   :  { %v826_v6 = vadd.f32 %v1860_v52, %v757_v33  ;;  %v792_v7 = vadd.f32 %v1860_v52, %v723_v34  ;;  %v824_v8 = vadd.f32 %v1860_v52, %v755_v35  ;;  %v795_v9 = vadd.f32 %v1860_v52, %v726_v1  ;;  %v491_v17 = vpop.f32.mrf.mxu0  ;;  %v619_v18 = vpop.f32.mrf.mxu1 }
 0x11d   :  { %v827_v10 = vadd.f32 %v1860_v52, %v758_v2  ;;  %v793_v11 = vadd.f32 %v1860_v52, %v724_v3  ;;  %v825_v12 = vadd.f32 %v1860_v52, %v756_v4  ;;  %v729_v13 = vmul.f32 %v1853_v45, %v660_v59 }
 0x11e   :  { %v761_v14 = vmul.f32 %v1853_v45, %v692_v60  ;;  %v727_v15 = vmul.f32 %v1853_v45, %v658_v61  ;;  %v759_v16 = vmul.f32 %v1853_v45, %v690_v62  ;;  %v1389_v19 = vpack.c.bf16 %v795_v9, %v794_v5  ;;  %v1609_v35 = vpop.f32.mrf.mxu0  ;;  %v1641_v36 = vpop.f32.mrf.mxu1 }
 0x11f   :  { %v1469_v20 = vpack.c.bf16 %v827_v10, %v826_v6  ;;  %v1384_v21 = vpack.c.bf16 %v793_v11, %v792_v7  ;;  %v1464_v22 = vpack.c.bf16 %v825_v12, %v824_v8  ;;  %v487_v23 = vadd.f32 %v1605_v41, %v1846_v40 }
 0x120   :  { %v615_v24 = vadd.f32 %v1637_v42, %v1846_v40  ;;  %v479_v25 = vadd.f32 %v1846_v40, %v478_v53  ;;  %v607_v26 = vadd.f32 %v1846_v40, %v606_v54  ;;  %1501 = vst [vmem:[%s2150_s4 + $0x58] sm:$0xff] %v1389_v19   ;;  %v500_v27 = vadd.f32 %v1608_v63, %v1846_v40  ;;  %v494_v56 = vpop.f32.mrf.mxu0  ;;  %v622_v57 = vpop.f32.mrf.mxu1 }
 0x121   :  { %1517 = vst [vmem:[%s2150_s4 + $0xd8] sm:$0xff] %v1469_v20   ;;  %1500 = vst [vmem:[%s2150_s4 + $0x50] sm:$0xff] %v1384_v21   ;;  %v628_v28 = vadd.f32 %v1640_v0, %v1846_v40  ;;  %v492_v29 = vadd.f32 %v1846_v40, %v491_v17  ;;  %v620_v30 = vadd.f32 %v1846_v40, %v619_v18  ;;  %v661_v31 = vmax.f32 %v487_v23, 0.0 }
 0x122   :  { %1516 = vst [vmem:[%s2150_s4 + $0xd0] sm:$0xff] %v1464_v22   ;;  %v693_v32 = vmax.f32 %v615_v24, 0.0  ;;  %v659_v33 = vmax.f32 %v479_v25, 0.0  ;;  %v691_v34 = vmax.f32 %v607_v26, 0.0  ;;  %v798_v37 = vadd.f32 %v1860_v52, %v729_v13 }
 0x123   :  { %v830_v38 = vadd.f32 %v1860_v52, %v761_v14  ;;  %v796_v39 = vadd.f32 %v1860_v52, %v727_v15  ;;  %v828_v41 = vadd.f32 %v1860_v52, %v759_v16  ;;  %v730_v42 = vmul.f32 %v1853_v45, %v661_v31 }
 0x124   :  { %v762_v43 = vmul.f32 %v1853_v45, %v693_v32  ;;  %v728_v44 = vmul.f32 %v1853_v45, %v659_v33  ;;  %v760_v46 = vmul.f32 %v1853_v45, %v691_v34  ;;  %v664_v47 = vmax.f32 %v500_v27, 0.0 }
 0x125   :  { %v696_v48 = vmax.f32 %v628_v28, 0.0  ;;  %v662_v49 = vmax.f32 %v492_v29, 0.0  ;;  %v694_v50 = vmax.f32 %v620_v30, 0.0  ;;  %v799_v51 = vadd.f32 %v1860_v52, %v730_v42 }
 0x126   :  { %v831_v53 = vadd.f32 %v1860_v52, %v762_v43  ;;  %v797_v54 = vadd.f32 %v1860_v52, %v728_v44  ;;  %v829_v55 = vadd.f32 %v1860_v52, %v760_v46  ;;  %v503_v62 = vadd.f32 %v1609_v35, %v1846_v40 }
 0x127   :  { %v1399_v58 = vpack.c.bf16 %v799_v51, %v798_v37  ;;  %v631_v63 = vadd.f32 %v1641_v36, %v1846_v40  ;;  %v495_v0 = vadd.f32 %v1846_v40, %v494_v56  ;;  %v623_v1 = vadd.f32 %v1846_v40, %v622_v57 }
 0x128   :  { %v1479_v59 = vpack.c.bf16 %v831_v53, %v830_v38  ;;  %v1394_v60 = vpack.c.bf16 %v797_v54, %v796_v39  ;;  %v1474_v61 = vpack.c.bf16 %v829_v55, %v828_v41  ;;  %v733_v2 = vmul.f32 %v1853_v45, %v664_v47 }
 0x129   :  { %1503 = vst [vmem:[%s2150_s4 + $0x68] sm:$0xff] %v1399_v58   ;;  %v765_v40 = vmul.f32 %v1853_v45, %v696_v48  ;;  %v731_v3 = vmul.f32 %v1853_v45, %v662_v49  ;;  %v763_v4 = vmul.f32 %v1853_v45, %v694_v50  ;;  %v665_v5 = vmax.f32 %v503_v62, 0.0 }
 0x12a   :  { %1519 = vst [vmem:[%s2150_s4 + $0xe8] sm:$0xff] %v1479_v59   ;;  %1502 = vst [vmem:[%s2150_s4 + $0x60] sm:$0xff] %v1394_v60   ;;  %v697_v6 = vmax.f32 %v631_v63, 0.0  ;;  %v663_v7 = vmax.f32 %v495_v0, 0.0  ;;  %v695_v8 = vmax.f32 %v623_v1, 0.0  ;;  %v802_v13 = vadd.f32 %v1860_v52, %v733_v2 }
 0x12b   :  { %1518 = vst [vmem:[%s2150_s4 + $0xe0] sm:$0xff] %v1474_v61   ;;  %v734_v9 = vmul.f32 %v1853_v45, %v665_v5  ;;  %v834_v14 = vadd.f32 %v1860_v52, %v765_v40  ;;  %v800_v15 = vadd.f32 %v1860_v52, %v731_v3  ;;  %v832_v16 = vadd.f32 %v1860_v52, %v763_v4 }
 0x12c   :  { %v766_v10 = vmul.f32 %v1853_v45, %v697_v6  ;;  %v732_v11 = vmul.f32 %v1853_v45, %v663_v7  ;;  %v764_v12 = vmul.f32 %v1853_v45, %v695_v8 }
 0x12d   :  { %v803_v17 = vadd.f32 %v1860_v52, %v734_v9 }
 0x12e   :  { %v835_v18 = vadd.f32 %v1860_v52, %v766_v10  ;;  %v801_v19 = vadd.f32 %v1860_v52, %v732_v11  ;;  %v833_v20 = vadd.f32 %v1860_v52, %v764_v12 }
 0x12f   :  { %v1409_v21 = vpack.c.bf16 %v803_v17, %v802_v13 }
 0x130   :  { %v1489_v22 = vpack.c.bf16 %v835_v18, %v834_v14  ;;  %v1404_v23 = vpack.c.bf16 %v801_v19, %v800_v15  ;;  %v1484_v45 = vpack.c.bf16 %v833_v20, %v832_v16 }
 0x131   :  { %1505 = vst [vmem:[%s2150_s4 + $0x78] sm:$0xff] %v1409_v21  }
 0x132   :  { %1521 = vst [vmem:[%s2150_s4 + $0xf8] sm:$0xff] %v1489_v22   ;;  %1504 = vst [vmem:[%s2150_s4 + $0x70] sm:$0xff] %v1404_v23  }
 0x133   :  { %1520 = vst [vmem:[%s2150_s4 + $0xf0] sm:$0xff] %v1484_v45  }

// kernel: convolution_block_forward.6
= control target key start
LH: loop header
LB: loop body
LE: loop exit
PB: predicated region body
PF: predicated region fallthrough
CT: control target
= control target key end

     0   :  { %s519_s1 = inlined_call_operand.vmem [shape: bf16[128,128], index: 1, kind: input, shape index: {}]   ;;  %s520_s0 = inlined_call_operand.vmem [shape: bf16[128,128], index: 0, kind: input, shape index: {}]   ;;  %s521_s2 = inlined_call_operand.vmem [shape: f32[1,128], index: 2, kind: input, shape index: {}]   ;;  %s522_s3 = inlined_call_operand.vmem [shape: f32[1,2,128], index: 3, kind: output, shape index: {}]  }
   0x1   :  { %v408_v0 = vld [vmem:[%s519_s1 + $0x38] sm:$0xff]   ;;  %v409_v1 = vld [vmem:[%s519_s1 + $0x30] sm:$0xff]   ;;  %v410_v2 = vld [vmem:[%s519_s1 + $0x28] sm:$0xff]  }
   0x2   :  { %360 = vmatprep.subr.bf16.mxu0 %v408_v0  ;;  %392 = vmatprep.subr.bf16.mxu1 %v408_v0  ;;  %v411_v3 = vld [vmem:[%s519_s1 + $0x20] sm:$0xff]   ;;  %v412_v5 = vld [vmem:[%s519_s1 + $0x18] sm:$0xff]   ;;  %v413_v7 = vld [vmem:[%s519_s1 + $0x10] sm:$0xff]  }
   0x3   :  { %361 = vmatpush3.bf16.msra.mxu0 %v408_v0  ;;  %400 = vmatpush3.bf16.msra.mxu1 %v408_v0  ;;  %v416_v4 = vld [vmem:[%s520_s0] sm:$0xff]   ;;  %v414_v8 = vld [vmem:[%s519_s1 + $0x8] sm:$0xff]   ;;  %v418_v12 = vld [vmem:[%s520_s0 + $0x10] sm:$0xff]  }
   0x4   :  { %362 = vmatprep.subr.bf16.mxu0 %v409_v1  ;;  %393 = vmatprep.subr.bf16.mxu1 %v409_v1  ;;  %v420_v6 = vld [vmem:[%s520_s0 + $0x20] sm:$0xff]   ;;  %v417_v10 = vld [vmem:[%s520_s0 + $0x8] sm:$0xff]   ;;  %v422_v13 = vld [vmem:[%s520_s0 + $0x30] sm:$0xff]  }
   0x5   :  { %376 = vmatprep.mubr.bf16.mxu0 %v416_v4  ;;  %384 = vmatprep.mubr.bf16.mxu1 %v420_v6  ;;  %v415_v9 = vld [vmem:[%s519_s1] sm:$0xff]   ;;  %v421_v11 = vld [vmem:[%s520_s0 + $0x28] sm:$0xff]   ;;  %v419_v14 = vld [vmem:[%s520_s0 + $0x18] sm:$0xff]  }
   0x6   :  { %v423_v15 = vld [vmem:[%s520_s0 + $0x38] sm:$0xff]   ;;  %v495_v18 = vld [vmem:[%s521_s2] ss:$0 sm:$0xff] }
   0x7   :  { %363 = vmatpush3.bf16.msra.mxu0 %v409_v1  ;;  %401 = vmatpush3.bf16.msra.mxu1 %v409_v1 }
   0x8   :  { %364 = vmatprep.subr.bf16.mxu0 %v410_v2  ;;  %394 = vmatprep.subr.bf16.mxu1 %v410_v2 }
   0xb   :  { %365 = vmatpush3.bf16.msra.mxu0 %v410_v2  ;;  %402 = vmatpush3.bf16.msra.mxu1 %v410_v2 }
   0xc   :  { %366 = vmatprep.subr.bf16.mxu0 %v411_v3  ;;  %395 = vmatprep.subr.bf16.mxu1 %v411_v3 }
   0xf   :  { %367 = vmatpush3.bf16.msra.mxu0 %v411_v3  ;;  %403 = vmatpush3.bf16.msra.mxu1 %v411_v3 }
  0x10   :  { %368 = vmatprep.subr.bf16.mxu0 %v412_v5  ;;  %396 = vmatprep.subr.bf16.mxu1 %v412_v5 }
  0x13   :  { %369 = vmatpush3.bf16.msra.mxu0 %v412_v5  ;;  %404 = vmatpush3.bf16.msra.mxu1 %v412_v5 }
  0x14   :  { %370 = vmatprep.subr.bf16.mxu0 %v413_v7  ;;  %397 = vmatprep.subr.bf16.mxu1 %v413_v7 }
  0x17   :  { %371 = vmatpush3.bf16.msra.mxu0 %v413_v7  ;;  %405 = vmatpush3.bf16.msra.mxu1 %v413_v7 }
  0x18   :  { %372 = vmatprep.subr.bf16.mxu0 %v414_v8  ;;  %398 = vmatprep.subr.bf16.mxu1 %v414_v8 }
  0x1b   :  { %373 = vmatpush3.bf16.msra.mxu0 %v414_v8  ;;  %406 = vmatpush3.bf16.msra.mxu1 %v414_v8 }
  0x1c   :  { %374 = vmatprep.subr.bf16.mxu0 %v415_v9  ;;  %399 = vmatprep.subr.bf16.mxu1 %v415_v9 }
  0x1f   :  { %375 = vmatpush3.bf16.msra.mxu0 %v415_v9  ;;  %407 = vmatpush3.bf16.msra.mxu1 %v415_v9 }
  0x22   :  { %377 = vmatmul.mubr.bf16.vlgmr.msra.gmra.mxu0 %v417_v10  ;;  %385 = vmatmul.mubr.bf16.vlgmr.msra.gmra.mxu1 %v421_v11 }
  0x23   :  { %380 = vmatprep.mubr.bf16.mxu0 %v418_v12  ;;  %388 = vmatprep.mubr.bf16.mxu1 %v422_v13 }
  0x2a   :  { %381 = vmatmul.mubr.bf16.gmra.mxu0 %v419_v14  ;;  %389 = vmatmul.mubr.bf16.gmra.mxu1 %v423_v15 }
  0xe2   :  { %v378_v16 = vpop.f32.mrf.mxu0  ;;  %v386_v17 = vpop.f32.mrf.mxu1 }
  0xe3   :  { %v193_v24 = vadd.f32 %v378_v16, %v495_v18  ;;  %v225_v0 = vadd.f32 %v386_v17, %v495_v18 }
  0xe4   :  { %v184_v19 = vpop.f32.mrf.mxu0  ;;  %v216_v20 = vpop.f32.mrf.mxu1 }
  0xe5   :  { %v185_v21 = vadd.f32 %v495_v18, %v184_v19  ;;  %v249_v31 = vmax.f32 %v193_v24, 0.0  ;;  %v217_v53 = vadd.f32 %v495_v18, %v216_v20  ;;  %v257_v11 = vmax.f32 %v225_v0, 0.0 }
  0xe6   :  { %v379_v22 = vpop.f32.mrf.mxu0  ;;  %v387_v23 = vpop.f32.mrf.mxu1 }
  0xe7   :  { %v196_v25 = vadd.f32 %v379_v22, %v495_v18  ;;  %v247_v27 = vmax.f32 %v185_v21, 0.0  ;;  %v287_v42 = vmul.f32 %v249_v31, %v249_v31  ;;  %v255_v3 = vmax.f32 %v217_v53, 0.0 }
  0xe8   :  { %v187_v26 = vpop.f32.mrf.mxu0  ;;  %v219_v30 = vpop.f32.mrf.mxu1  ;;  %v228_v6 = vadd.f32 %v387_v23, %v495_v18  ;;  %v295_v24 = vmul.f32 %v257_v11, %v257_v11 }
  0xe9   :  { %v188_v28 = vadd.f32 %v495_v18, %v187_v26  ;;  %v250_v33 = vmax.f32 %v196_v25, 0.0  ;;  %v285_v35 = vmul.f32 %v247_v27, %v247_v27  ;;  %v220_v59 = vadd.f32 %v495_v18, %v219_v30 }
  0xea   :  { %v382_v29 = vpop.f32.mrf.mxu0  ;;  %v390_v41 = vpop.f32.mrf.mxu1  ;;  %v293_v13 = vmul.f32 %v255_v3, %v255_v3  ;;  %v258_v19 = vmax.f32 %v228_v6, 0.0 }
  0xeb   :  { %v248_v32 = vmax.f32 %v188_v28, 0.0  ;;  %v209_v39 = vadd.f32 %v382_v29, %v495_v18  ;;  %v288_v46 = vmul.f32 %v250_v33, %v250_v33  ;;  %v256_v9 = vmax.f32 %v220_v59, 0.0 }
  0xec   :  { %v200_v34 = vpop.f32.mrf.mxu0  ;;  %v232_v54 = vpop.f32.mrf.mxu1  ;;  %v241_v26 = vadd.f32 %v390_v41, %v495_v18  ;;  %v296_v28 = vmul.f32 %v258_v19, %v258_v19 }
  0xed   :  { %v263_v36 = vadd.f32 %v248_v32, %v247_v27  ;;  %v286_v37 = vmul.f32 %v248_v32, %v248_v32  ;;  %v201_v38 = vadd.f32 %v495_v18, %v200_v34  ;;  %v253_v52 = vmax.f32 %v209_v39, 0.0 }
  0xee   :  { %v383_v40 = vpop.f32.mrf.mxu0  ;;  %v391_v1 = vpop.f32.mrf.mxu1  ;;  %v233_v16 = vadd.f32 %v495_v18, %v232_v54  ;;  %v294_v20 = vmul.f32 %v256_v9, %v256_v9 }
  0xef   :  { %v264_v43 = vadd.f32 %v263_v36, %v249_v31  ;;  %v301_v44 = vadd.f32 %v286_v37, %v285_v35  ;;  %v251_v45 = vmax.f32 %v201_v38, 0.0  ;;  %v212_v50 = vadd.f32 %v383_v40, %v495_v18 }
  0xf0   :  { %v203_v47 = vpop.f32.mrf.mxu0  ;;  %v291_v2 = vmul.f32 %v253_v52, %v253_v52  ;;  %v235_v12 = vpop.f32.mrf.mxu1  ;;  %v259_v27 = vmax.f32 %v233_v16, 0.0  ;;  %v244_v31 = vadd.f32 %v391_v1, %v495_v18 }
  0xf1   :  { %v302_v48 = vadd.f32 %v301_v44, %v287_v42  ;;  %v265_v49 = vadd.f32 %v264_v43, %v250_v33  ;;  %v204_v51 = vadd.f32 %v495_v18, %v203_v47  ;;  %v289_v56 = vmul.f32 %v251_v45, %v251_v45 }
  0xf2   :  { %v254_v61 = vmax.f32 %v212_v50, 0.0  ;;  %v236_v22 = vadd.f32 %v495_v18, %v235_v12  ;;  %v261_v33 = vmax.f32 %v241_v26, 0.0  ;;  %v297_v35 = vmul.f32 %v259_v27, %v259_v27 }
  0xf3   :  { %v266_v55 = vadd.f32 %v265_v49, %v251_v45  ;;  %v303_v57 = vadd.f32 %v302_v48, %v288_v46  ;;  %v252_v58 = vmax.f32 %v204_v51, 0.0  ;;  %v262_v38 = vmax.f32 %v244_v31, 0.0 }
  0xf4   :  { %v292_v7 = vmul.f32 %v254_v61, %v254_v61  ;;  %v260_v32 = vmax.f32 %v236_v22, 0.0  ;;  %v299_v42 = vmul.f32 %v261_v33, %v261_v33 }
  0xf5   :  { %v304_v60 = vadd.f32 %v303_v57, %v289_v56  ;;  %v267_v62 = vadd.f32 %v266_v55, %v252_v58  ;;  %v290_v63 = vmul.f32 %v252_v58, %v252_v58  ;;  %v300_v45 = vmul.f32 %v262_v38, %v262_v38 }
  0xf6   :  { %v298_v40 = vmul.f32 %v260_v32, %v260_v32 }
  0xf7   :  { %v268_v4 = vadd.f32 %v267_v62, %v253_v52  ;;  %v305_v5 = vadd.f32 %v304_v60, %v290_v63 }
  0xf9   :  { %v306_v8 = vadd.f32 %v305_v5, %v291_v2  ;;  %v269_v10 = vadd.f32 %v268_v4, %v254_v61 }
  0xfb   :  { %v270_v14 = vadd.f32 %v269_v10, %v255_v3  ;;  %v307_v15 = vadd.f32 %v306_v8, %v292_v7 }
  0xfd   :  { %v271_v17 = vadd.f32 %v270_v14, %v256_v9  ;;  %v308_v21 = vadd.f32 %v307_v15, %v293_v13 }
  0xff   :  { %v272_v25 = vadd.f32 %v271_v17, %v257_v11  ;;  %v309_v23 = vadd.f32 %v308_v21, %v294_v20 }
 0x101   :  { %v310_v29 = vadd.f32 %v309_v23, %v295_v24  ;;  %v273_v30 = vadd.f32 %v272_v25, %v258_v19 }
 0x103   :  { %v274_v34 = vadd.f32 %v273_v30, %v259_v27  ;;  %v311_v36 = vadd.f32 %v310_v29, %v296_v28 }
 0x105   :  { %v312_v37 = vadd.f32 %v311_v36, %v297_v35  ;;  %v275_v39 = vadd.f32 %v274_v34, %v260_v32 }
 0x107   :  { %v276_v43 = vadd.f32 %v275_v39, %v261_v33  ;;  %v313_v44 = vadd.f32 %v312_v37, %v298_v40 }
 0x109   :  { %v277_v41 = vadd.f32 %v276_v43, %v262_v38  ;;  %v314_v46 = vadd.f32 %v313_v44, %v299_v42 }
 0x10b   :  { %v278_v47 = vrot.slane %v277_v41, 4  ;;  %v315_v48 = vadd.f32 %v314_v46, %v300_v45 }
 0x10d   :  { %v279_v49 = vadd.f32 %v278_v47, %v277_v41  ;;  %v316_v50 = vrot.slane %v315_v48, 4 }
 0x10f   :  { %v280_v18 = vrot.slane %v279_v49, 2  ;;  %v317_v51 = vadd.f32 %v316_v50, %v315_v48 }
 0x111   :  { %v281_v52 = vadd.f32 %v280_v18, %v279_v49  ;;  %v318_v53 = vrot.slane %v317_v51, 2 }
 0x113   :  { %v282_v54 = vrot.slane %v281_v52, 1  ;;  %v319_v55 = vadd.f32 %v318_v53, %v317_v51 }
 0x115   :  { %v283_v56 = vadd.f32 %v282_v54, %v281_v52  ;;  %v320_v57 = vrot.slane %v319_v55, 1 }
 0x117   :  { %284 = vst [vmem:[%s522_s3] sm:$0x1] %v283_v56  ;;  %v321_v58 = vadd.f32 %v320_v57, %v319_v55 }
 0x119   :  { %322 = vst [vmem:[%s522_s3 + $0x1] sm:$0x1] %v321_v58 }

// kernel: convolution_block_forward.7
= control target key start
LH: loop header
LB: loop body
LE: loop exit
PB: predicated region body
PF: predicated region fallthrough
CT: control target
= control target key end

     0   :  { %s611_s1 = inlined_call_operand.vmem [shape: bf16[128,128], index: 1, kind: input, shape index: {}]   ;;  %s612_s0 = inlined_call_operand.vmem [shape: bf16[128,128], index: 0, kind: input, shape index: {}]   ;;  %s613_s2 = inlined_call_operand.vmem [shape: f32[1,128], index: 2, kind: input, shape index: {}]   ;;  %s614_s3 = inlined_call_operand.vmem [shape: f32[2,128], index: 3, kind: input, shape index: {}]   ;;  %s615_s4 = inlined_call_operand.vmem [shape: f32[128,128], index: 4, kind: output, shape index: {}]  }
   0x1   :  { %v411_v0 = vld [vmem:[%s611_s1 + $0x38] sm:$0xff]   ;;  %v412_v1 = vld [vmem:[%s611_s1 + $0x30] sm:$0xff]   ;;  %v413_v2 = vld [vmem:[%s611_s1 + $0x28] sm:$0xff]  }
   0x2   :  { %363 = vmatprep.subr.bf16.mxu0 %v411_v0  ;;  %395 = vmatprep.subr.bf16.mxu1 %v411_v0  ;;  %v414_v3 = vld [vmem:[%s611_s1 + $0x20] sm:$0xff]   ;;  %v415_v6 = vld [vmem:[%s611_s1 + $0x18] sm:$0xff]   ;;  %v416_v7 = vld [vmem:[%s611_s1 + $0x10] sm:$0xff]  }
   0x3   :  { %364 = vmatpush3.bf16.msra.mxu0 %v411_v0  ;;  %403 = vmatpush3.bf16.msra.mxu1 %v411_v0  ;;  %v419_v4 = vld [vmem:[%s612_s0] sm:$0xff]   ;;  %v417_v8 = vld [vmem:[%s611_s1 + $0x8] sm:$0xff]   ;;  %v423_v12 = vld [vmem:[%s612_s0 + $0x10] sm:$0xff]  }
   0x4   :  { %365 = vmatprep.subr.bf16.mxu0 %v412_v1  ;;  %396 = vmatprep.subr.bf16.mxu1 %v412_v1  ;;  %v420_v5 = vld [vmem:[%s612_s0 + $0x20] sm:$0xff]   ;;  %v421_v10 = vld [vmem:[%s612_s0 + $0x8] sm:$0xff]   ;;  %v424_v13 = vld [vmem:[%s612_s0 + $0x30] sm:$0xff]  }
   0x5   :  { %379 = vmatprep.mubr.bf16.mxu0 %v419_v4  ;;  %387 = vmatprep.mubr.bf16.mxu1 %v420_v5  ;;  %v418_v9 = vld [vmem:[%s611_s1] sm:$0xff]   ;;  %v422_v11 = vld [vmem:[%s612_s0 + $0x28] sm:$0xff]   ;;  %v425_v14 = vld [vmem:[%s612_s0 + $0x18] sm:$0xff]  }
   0x6   :  { %v426_v15 = vld [vmem:[%s612_s0 + $0x38] sm:$0xff]   ;;  %v503_v16 = vld [vmem:[%s613_s2] ss:$0 sm:$0xff]  ;;  %v517_v28 = vld [vmem:[%s614_s3 + $0x1] ss:$0 sm:$0xff] }
   0x7   :  { %366 = vmatpush3.bf16.msra.mxu0 %v412_v1  ;;  %404 = vmatpush3.bf16.msra.mxu1 %v412_v1  ;;  %v510_v21 = vld [vmem:[%s614_s3] ss:$0 sm:$0xff] }
   0x8   :  { %367 = vmatprep.subr.bf16.mxu0 %v413_v2  ;;  %397 = vmatprep.subr.bf16.mxu1 %v413_v2 }
   0xb   :  { %368 = vmatpush3.bf16.msra.mxu0 %v413_v2  ;;  %405 = vmatpush3.bf16.msra.mxu1 %v413_v2 }
   0xc   :  { %369 = vmatprep.subr.bf16.mxu0 %v414_v3  ;;  %398 = vmatprep.subr.bf16.mxu1 %v414_v3 }
   0xf   :  { %370 = vmatpush3.bf16.msra.mxu0 %v414_v3  ;;  %406 = vmatpush3.bf16.msra.mxu1 %v414_v3 }
  0x10   :  { %371 = vmatprep.subr.bf16.mxu0 %v415_v6  ;;  %399 = vmatprep.subr.bf16.mxu1 %v415_v6 }
  0x13   :  { %372 = vmatpush3.bf16.msra.mxu0 %v415_v6  ;;  %407 = vmatpush3.bf16.msra.mxu1 %v415_v6 }
  0x14   :  { %373 = vmatprep.subr.bf16.mxu0 %v416_v7  ;;  %400 = vmatprep.subr.bf16.mxu1 %v416_v7 }
  0x17   :  { %374 = vmatpush3.bf16.msra.mxu0 %v416_v7  ;;  %408 = vmatpush3.bf16.msra.mxu1 %v416_v7 }
  0x18   :  { %375 = vmatprep.subr.bf16.mxu0 %v417_v8  ;;  %401 = vmatprep.subr.bf16.mxu1 %v417_v8 }
  0x1b   :  { %376 = vmatpush3.bf16.msra.mxu0 %v417_v8  ;;  %409 = vmatpush3.bf16.msra.mxu1 %v417_v8 }
  0x1c   :  { %377 = vmatprep.subr.bf16.mxu0 %v418_v9  ;;  %402 = vmatprep.subr.bf16.mxu1 %v418_v9 }
  0x1f   :  { %378 = vmatpush3.bf16.msra.mxu0 %v418_v9  ;;  %410 = vmatpush3.bf16.msra.mxu1 %v418_v9 }
  0x22   :  { %380 = vmatmul.mubr.bf16.vlgmr.msra.gmra.mxu0 %v421_v10  ;;  %388 = vmatmul.mubr.bf16.vlgmr.msra.gmra.mxu1 %v422_v11 }
  0x23   :  { %383 = vmatprep.mubr.bf16.mxu0 %v423_v12  ;;  %391 = vmatprep.mubr.bf16.mxu1 %v424_v13 }
  0x2a   :  { %384 = vmatmul.mubr.bf16.gmra.mxu0 %v425_v14  ;;  %392 = vmatmul.mubr.bf16.gmra.mxu1 %v426_v15 }
  0xe2   :  { %v381_v17 = vpop.f32.mrf.mxu0  ;;  %v389_v18 = vpop.f32.mrf.mxu1 }
  0xe3   :  { %v196_v19 = vadd.f32 %v381_v17, %v503_v16  ;;  %v228_v20 = vadd.f32 %v389_v18, %v503_v16 }
  0xe4   :  { %v187_v22 = vpop.f32.mrf.mxu0  ;;  %v219_v23 = vpop.f32.mrf.mxu1 }
  0xe5   :  { %v252_v24 = vmax.f32 %v196_v19, 0.0  ;;  %v260_v25 = vmax.f32 %v228_v20, 0.0  ;;  %v188_v26 = vadd.f32 %v503_v16, %v187_v22  ;;  %v220_v27 = vadd.f32 %v503_v16, %v219_v23 }
  0xe6   :  { %v382_v29 = vpop.f32.mrf.mxu0  ;;  %v390_v30 = vpop.f32.mrf.mxu1 }
  0xe7   :  { %v273_v31 = vmul.f32 %v510_v21, %v252_v24  ;;  %v281_v32 = vmul.f32 %v510_v21, %v260_v25  ;;  %v250_v33 = vmax.f32 %v188_v26, 0.0  ;;  %v258_v34 = vmax.f32 %v220_v27, 0.0 }
  0xe8   :  { %v199_v35 = vadd.f32 %v382_v29, %v503_v16  ;;  %v231_v36 = vadd.f32 %v390_v30, %v503_v16  ;;  %v190_v37 = vpop.f32.mrf.mxu0  ;;  %v222_v38 = vpop.f32.mrf.mxu1 }
  0xe9   :  { %v294_v39 = vadd.f32 %v517_v28, %v273_v31  ;;  %v302_v40 = vadd.f32 %v517_v28, %v281_v32  ;;  %v271_v41 = vmul.f32 %v510_v21, %v250_v33  ;;  %v279_v42 = vmul.f32 %v510_v21, %v258_v34 }
  0xea   :  { %v253_v43 = vmax.f32 %v199_v35, 0.0  ;;  %v261_v44 = vmax.f32 %v231_v36, 0.0  ;;  %v191_v45 = vadd.f32 %v503_v16, %v190_v37  ;;  %v223_v46 = vadd.f32 %v503_v16, %v222_v38  ;;  %v385_v47 = vpop.f32.mrf.mxu0  ;;  %v393_v48 = vpop.f32.mrf.mxu1 }
  0xeb   :  { %310 = vst [vmem:[%s615_s4 + $0x10] sm:$0xff] %v294_v39  ;;  %318 = vst [vmem:[%s615_s4 + $0x50] sm:$0xff] %v302_v40  ;;  %v292_v49 = vadd.f32 %v517_v28, %v271_v41  ;;  %v300_v50 = vadd.f32 %v517_v28, %v279_v42  ;;  %v212_v51 = vadd.f32 %v385_v47, %v503_v16 }
  0xec   :  { %v244_v52 = vadd.f32 %v393_v48, %v503_v16  ;;  %v274_v53 = vmul.f32 %v510_v21, %v253_v43  ;;  %v282_v54 = vmul.f32 %v510_v21, %v261_v44  ;;  %v251_v55 = vmax.f32 %v191_v45, 0.0  ;;  %v203_v57 = vpop.f32.mrf.mxu0  ;;  %v235_v58 = vpop.f32.mrf.mxu1 }
  0xed   :  { %v259_v56 = vmax.f32 %v223_v46, 0.0  ;;  %308 = vst [vmem:[%s615_s4] sm:$0xff] %v292_v49  ;;  %316 = vst [vmem:[%s615_s4 + $0x40] sm:$0xff] %v300_v50  ;;  %v256_v59 = vmax.f32 %v212_v51, 0.0  ;;  %v204_v61 = vadd.f32 %v503_v16, %v203_v57  ;;  %v236_v62 = vadd.f32 %v503_v16, %v235_v58 }
  0xee   :  { %v264_v60 = vmax.f32 %v244_v52, 0.0  ;;  %v295_v63 = vadd.f32 %v517_v28, %v274_v53  ;;  %v303_v0 = vadd.f32 %v517_v28, %v282_v54  ;;  %v272_v1 = vmul.f32 %v510_v21, %v251_v55  ;;  %v386_v3 = vpop.f32.mrf.mxu0  ;;  %v394_v4 = vpop.f32.mrf.mxu1 }
  0xef   :  { %v280_v2 = vmul.f32 %v510_v21, %v259_v56  ;;  %v277_v5 = vmul.f32 %v510_v21, %v256_v59  ;;  %v254_v7 = vmax.f32 %v204_v61, 0.0  ;;  %v262_v8 = vmax.f32 %v236_v62, 0.0 }
  0xf0   :  { %v285_v6 = vmul.f32 %v510_v21, %v264_v60  ;;  %311 = vst [vmem:[%s615_s4 + $0x18] sm:$0xff] %v295_v63  ;;  %319 = vst [vmem:[%s615_s4 + $0x58] sm:$0xff] %v303_v0  ;;  %v293_v9 = vadd.f32 %v517_v28, %v272_v1  ;;  %v215_v11 = vadd.f32 %v386_v3, %v503_v16  ;;  %v206_v13 = vpop.f32.mrf.mxu0  ;;  %v238_v14 = vpop.f32.mrf.mxu1 }
  0xf1   :  { %v301_v10 = vadd.f32 %v517_v28, %v280_v2  ;;  %v247_v12 = vadd.f32 %v394_v4, %v503_v16  ;;  %v298_v15 = vadd.f32 %v517_v28, %v277_v5  ;;  %v275_v18 = vmul.f32 %v510_v21, %v254_v7 }
  0xf2   :  { %v306_v17 = vadd.f32 %v517_v28, %v285_v6  ;;  %v283_v19 = vmul.f32 %v510_v21, %v262_v8  ;;  %309 = vst [vmem:[%s615_s4 + $0x8] sm:$0xff] %v293_v9  ;;  %v257_v20 = vmax.f32 %v215_v11, 0.0  ;;  %v207_v23 = vadd.f32 %v503_v16, %v206_v13 }
  0xf3   :  { %317 = vst [vmem:[%s615_s4 + $0x48] sm:$0xff] %v301_v10  ;;  %v265_v22 = vmax.f32 %v247_v12, 0.0  ;;  %v239_v24 = vadd.f32 %v503_v16, %v238_v14  ;;  %314 = vst [vmem:[%s615_s4 + $0x30] sm:$0xff] %v298_v15  ;;  %v296_v25 = vadd.f32 %v517_v28, %v275_v18 }
  0xf4   :  { %322 = vst [vmem:[%s615_s4 + $0x70] sm:$0xff] %v306_v17  ;;  %v304_v26 = vadd.f32 %v517_v28, %v283_v19  ;;  %v278_v27 = vmul.f32 %v510_v21, %v257_v20  ;;  %v255_v30 = vmax.f32 %v207_v23, 0.0 }
  0xf5   :  { %v286_v29 = vmul.f32 %v510_v21, %v265_v22  ;;  %v263_v31 = vmax.f32 %v239_v24, 0.0  ;;  %312 = vst [vmem:[%s615_s4 + $0x20] sm:$0xff] %v296_v25 }
  0xf6   :  { %320 = vst [vmem:[%s615_s4 + $0x60] sm:$0xff] %v304_v26  ;;  %v299_v16 = vadd.f32 %v517_v28, %v278_v27  ;;  %v276_v33 = vmul.f32 %v510_v21, %v255_v30 }
  0xf7   :  { %v307_v32 = vadd.f32 %v517_v28, %v286_v29  ;;  %v284_v34 = vmul.f32 %v510_v21, %v263_v31 }
  0xf8   :  { %315 = vst [vmem:[%s615_s4 + $0x38] sm:$0xff] %v299_v16  ;;  %v297_v35 = vadd.f32 %v517_v28, %v276_v33 }
  0xf9   :  { %323 = vst [vmem:[%s615_s4 + $0x78] sm:$0xff] %v307_v32  ;;  %v305_v36 = vadd.f32 %v517_v28, %v284_v34 }
  0xfa   :  { %313 = vst [vmem:[%s615_s4 + $0x28] sm:$0xff] %v297_v35 }
  0xfb   :  { %321 = vst [vmem:[%s615_s4 + $0x68] sm:$0xff] %v305_v36 }

</bundles_post_ra>
